<compile_context>
chip_gen: v7x
topology: tpu7x:2x2x1
jax: 0.10.0
libtpu: 0.0.40
codegen_flags: <defaults>
</compile_context>

<pallas_src>
import math

import jax
import jax.numpy as jnp
from jax.experimental import pallas as pl
from jax.experimental.pallas import tpu as pltpu

# ----------------------------- small config ---------------------------------
HIDDEN = 32          # roberta hidden_size (real model: 768)
N_HEADS = 4          # real model: 12
HEAD_DIM = HIDDEN // N_HEADS
INTERMEDIATE = 64    # real model: 3072
N_LAYERS = 2         # real model: 12
VOCAB = 100          # real model: 250002
MAX_POS = 64
TYPE_VOCAB = 1
NUM_TAGS = 8
CLS_PAD = 128        # lane-dense classifier output width (slice to NUM_TAGS outside)
PAD_IDX = 1          # roberta padding_idx
LN_EPS = 1e-5
# HF uses finfo(float32).min; -1e9 gives the identical softmax result here and
# is safe against -inf/NaN after max-subtraction.
NEG_BIG = -1e9


# ------------------------------ fused kernel ---------------------------------
def _encoder_kernel(x_ref, kvalid_ref, emb_ln_ref,
                    wqkv_ref, bqkv_ref, wo_ref, bo_ref, ln1_ref,
                    wi_ref, bi_ref, wo2_ref, bo2_ref, ln2_ref,
                    clsw_ref, clsb_ref, o_ref):
    f32 = jnp.float32
    bf16 = jnp.bfloat16
    scale = 1.0 / math.sqrt(HEAD_DIM)

    def ln(v, p2):                       # p2: [2, H] = (gamma; beta), f32
        g = p2[0:1, :]
        b = p2[1:2, :]
        mu = jnp.mean(v, axis=-1, keepdims=True)
        vc = v - mu
        var = jnp.mean(vc * vc, axis=-1, keepdims=True)
        return vc * jax.lax.rsqrt(var + LN_EPS) * g + b

    def gelu(v):                         # exact erf-GELU (HF "gelu")
        # TODO(synk): switch to tanh-approx GELU at real I=3072 if tolerance allows.
        return 0.5 * v * (1.0 + jax.lax.erf(v * (1.0 / math.sqrt(2.0))))

    x = x_ref[0].astype(f32)             # [S, H] embedding sum for this batch row

    # additive attention mask built in-kernel from the key-validity row: [1, S]
    add_mask = jnp.where(kvalid_ref[0] > 0.0, 0.0, NEG_BIG).astype(f32)

    # embedding LayerNorm
    x = ln(x, emb_ln_ref[...])

    for l in range(N_LAYERS):
        # ---- fused QKV projection: one bf16 MXU pass, f32 accumulate ----
        qkv = jnp.dot(x.astype(bf16), wqkv_ref[l],
                      preferred_element_type=f32) + bqkv_ref[l]      # [S, 3H] f32
        qkv_bf = qkv.astype(bf16)

        # ---- attention per head; per-head (q|k|v) is one contiguous 24-lane
        #      window (column-reordered at init) ----
        ctx_heads = []
        for h in range(N_HEADS):
            base = h * 3 * HEAD_DIM
            blk = qkv_bf[:, base:base + 3 * HEAD_DIM]                # [S, 3*dh]
            qh = blk[:, :HEAD_DIM]
            kh = blk[:, HEAD_DIM:2 * HEAD_DIM]
            vh = blk[:, 2 * HEAD_DIM:3 * HEAD_DIM]

            s = jax.lax.dot_general(qh, kh, (((1,), (1,)), ((), ())),
                                    preferred_element_type=f32) * scale
            s = s + add_mask                                         # [S, S]
            s = s - jnp.max(s, axis=-1, keepdims=True)
            p = jnp.exp(s)
            p = p * pl.reciprocal(jnp.sum(p, axis=-1, keepdims=True), approx=True)
            ctx_heads.append(jnp.dot(p.astype(bf16), vh,
                                     preferred_element_type=f32))    # [S, dh]

        # ---- single output projection over the assembled ctx slab ----
        ctx = jnp.concatenate(ctx_heads, axis=-1)                    # [S, H]
        attn_out = jnp.dot(ctx.astype(bf16), wo_ref[l],
                           preferred_element_type=f32) + bo_ref[l]
        x = ln(attn_out + x, ln1_ref[l])                             # post-LN

        # ---- FFN ----
        ffn = jnp.dot(x.astype(bf16), wi_ref[l],
                      preferred_element_type=f32) + bi_ref[l]
        ffn = gelu(ffn)
        ffn = jnp.dot(ffn.astype(bf16), wo2_ref[l],
                      preferred_element_type=f32) + bo2_ref[l]
        x = ln(ffn + x, ln2_ref[l])                                  # post-LN

    # ---- classifier (lane-dense padded output) ----
    logits = jnp.dot(x.astype(bf16), clsw_ref[...],
                     preferred_element_type=f32) + clsb_ref[...]
    o_ref[0] = logits.astype(o_ref.dtype)


def encoder_forward(x, key_valid, p):
    """x: [B, S, H] embedding sums, key_valid: [B, 1, S] -> padded logits [B, S, 128]."""
    B, S, _ = x.shape

    def wspec(shape):                      # full-array resident weight spec
        nd = len(shape)
        return pl.BlockSpec(shape, lambda b, _nd=nd: (0,) * _nd)

    return pl.pallas_call(
        _encoder_kernel,
        grid=(B,),
        out_shape=jax.ShapeDtypeStruct((B, S, CLS_PAD), jnp.float32),
        in_specs=[
            pl.BlockSpec((1, S, HIDDEN), lambda b: (b, 0, 0)),
            pl.BlockSpec((1, 1, S), lambda b: (b, 0, 0)),
            wspec(p["emb_ln"].shape),
            wspec(p["wqkv"].shape), wspec(p["bqkv"].shape),
            wspec(p["wo"].shape), wspec(p["bo"].shape), wspec(p["ln1"].shape),
            wspec(p["wi"].shape), wspec(p["bi"].shape),
            wspec(p["wo2"].shape), wspec(p["bo2"].shape), wspec(p["ln2"].shape),
            wspec(p["cls_w"].shape), wspec(p["cls_b"].shape),
        ],
        out_specs=pl.BlockSpec((1, S, CLS_PAD), lambda b: (b, 0, 0)),
        compiler_params=pltpu.CompilerParams(dimension_semantics=("parallel",)),
    )(x, key_valid, p["emb_ln"], p["wqkv"], p["bqkv"], p["wo"], p["bo"], p["ln1"],
      p["wi"], p["bi"], p["wo2"], p["bo2"], p["ln2"], p["cls_w"], p["cls_b"])


# ------------------------------ params ---------------------------------------
def init_params(key):
    keys = iter(jax.random.split(key, 64))

    def w(shape):
        return jax.random.normal(next(keys), shape, jnp.float32) * 0.02

    def ln_pair():
        return jnp.stack([jnp.ones((HIDDEN,), jnp.float32),
                          jnp.zeros((HIDDEN,), jnp.float32)])   # [2, H]

    def interleave_heads(wq_, wk_, wv_):
        # per-head contiguous columns: [q_0|k_0|v_0 | q_1|k_1|v_1 | ...]
        cols = []
        for h in range(N_HEADS):
            lo, hi = h * HEAD_DIM, (h + 1) * HEAD_DIM
            cols += [wq_[:, lo:hi], wk_[:, lo:hi], wv_[:, lo:hi]]
        return jnp.concatenate(cols, axis=1)                     # [H, 3H]

    wqkv, bqkv, wo, bo, ln1, wi, bi, wo2, bo2, ln2 = ([] for _ in range(10))
    for _ in range(N_LAYERS):
        wq_, wk_, wv_ = w((HIDDEN, HIDDEN)), w((HIDDEN, HIDDEN)), w((HIDDEN, HIDDEN))
        wqkv.append(interleave_heads(wq_, wk_, wv_))
        bqkv.append(jnp.zeros((1, 3 * HIDDEN), jnp.float32))
        wo.append(w((HIDDEN, HIDDEN)))
        bo.append(jnp.zeros((1, HIDDEN), jnp.float32))
        ln1.append(ln_pair())
        wi.append(w((HIDDEN, INTERMEDIATE)))
        bi.append(jnp.zeros((1, INTERMEDIATE), jnp.float32))
        wo2.append(w((INTERMEDIATE, HIDDEN)))
        bo2.append(jnp.zeros((1, HIDDEN), jnp.float32))
        ln2.append(ln_pair())

    cls_w = w((HIDDEN, NUM_TAGS))
    cls_w_pad = jnp.zeros((HIDDEN, CLS_PAD), jnp.float32).at[:, :NUM_TAGS].set(cls_w)
    cls_b_pad = jnp.zeros((1, CLS_PAD), jnp.float32)

    bf16 = jnp.bfloat16   # matmul weights stored bf16 and fed to the MXU as bf16
    return {
        "word_emb": w((VOCAB, HIDDEN)),
        "pos_emb": w((MAX_POS, HIDDEN)),
        "type_emb": w((TYPE_VOCAB, HIDDEN)),
        "emb_ln": ln_pair(),
        "wqkv": jnp.stack(wqkv).astype(bf16),
        "bqkv": jnp.stack(bqkv),
        "wo": jnp.stack(wo).astype(bf16),
        "bo": jnp.stack(bo),
        "ln1": jnp.stack(ln1),
        "wi": jnp.stack(wi).astype(bf16),
        "bi": jnp.stack(bi),
        "wo2": jnp.stack(wo2).astype(bf16),
        "bo2": jnp.stack(bo2),
        "ln2": jnp.stack(ln2),
        "cls_w": cls_w_pad.astype(bf16),
        "cls_b": cls_b_pad,
    }


# ------------------------------ forward (glue) --------------------------------
def pos_model_forward(params, input_ids, attention_mask):
    """Semantics of POSModel.forward: roberta(input_ids, mask).last_hidden_state @ classifier."""
    B, S = input_ids.shape

    # --- embeddings: gathers stay in XLA glue; everything after is ONE kernel ---
    mask_int = (input_ids != PAD_IDX).astype(jnp.int32)
    position_ids = jnp.cumsum(mask_int, axis=1) * mask_int + PAD_IDX   # roberta positions
    h = (jnp.take(params["word_emb"], input_ids, axis=0)
         + jnp.take(params["pos_emb"], position_ids, axis=0)
         + params["type_emb"][0][None, None, :])
    x = h.astype(jnp.float32)                                          # [B, S, H]

    # per-batch key-validity row; the additive mask is built inside the kernel
    key_valid = attention_mask.astype(jnp.float32).reshape(B, 1, S)

    logits_pad = encoder_forward(x, key_valid, params)                 # [B, S, 128]
    return logits_pad[..., :NUM_TAGS]


# --------------------------------- main --------------------------------------
if __name__ == "__main__":
    B, S = 2, 8
    key = jax.random.PRNGKey(0)
    k_param, k_ids = jax.random.split(key)

    params = init_params(k_param)

    input_ids = jax.random.randint(k_ids, (B, S), 2, VOCAB, dtype=jnp.int32)
    # pad the last two tokens of the second sequence
    input_ids = input_ids.at[1, S - 2:].set(PAD_IDX)
    attention_mask = (input_ids != PAD_IDX).astype(jnp.int32)

    fwd = jax.jit(pos_model_forward)
    logits = fwd(params, input_ids, attention_mask)
    logits = jax.block_until_ready(logits)
    assert logits.shape == (B, S, NUM_TAGS)
    assert bool(jnp.all(jnp.isfinite(logits)))
    print("KERNEL_OK")
</pallas_src>

<mosaic_0001>
module attributes {stable_mosaic.version = 11 : i64} {
  func.func @_encoder_kernel(%arg0: i32, %arg1: memref<1x8x32xf32, #tpu.memory_space<vmem>>, %arg2: memref<1x1x8xf32, #tpu.memory_space<vmem>>, %arg3: memref<2x32xf32, #tpu.memory_space<vmem>>, %arg4: memref<2x32x96xbf16, #tpu.memory_space<vmem>>, %arg5: memref<2x1x96xf32, #tpu.memory_space<vmem>>, %arg6: memref<2x32x32xbf16, #tpu.memory_space<vmem>>, %arg7: memref<2x1x32xf32, #tpu.memory_space<vmem>>, %arg8: memref<2x2x32xf32, #tpu.memory_space<vmem>>, %arg9: memref<2x32x64xbf16, #tpu.memory_space<vmem>>, %arg10: memref<2x1x64xf32, #tpu.memory_space<vmem>>, %arg11: memref<2x64x32xbf16, #tpu.memory_space<vmem>>, %arg12: memref<2x1x32xf32, #tpu.memory_space<vmem>>, %arg13: memref<2x2x32xf32, #tpu.memory_space<vmem>>, %arg14: memref<32x128xbf16, #tpu.memory_space<vmem>>, %arg15: memref<1x128xf32, #tpu.memory_space<vmem>>, %arg16: memref<1x8x128xf32, #tpu.memory_space<vmem>>) attributes {dimension_semantics = [#tpu.dimension_semantics<parallel>], iteration_bounds = array<i64: 2>, scalar_prefetch = 0 : i64, scratch_operands = 0 : i64, tpu.core_type = #tpu.core_type<tc>, window_params = [{transform_indices = @transform_0, window_bounds = array<i64: 1, 8, 32>}, {transform_indices = @transform_1, window_bounds = array<i64: 1, 1, 8>}, {pipeline_mode = #tpu.pipeline_mode<synchronous>, transform_indices = @transform_2, window_bounds = array<i64: 2, 32>}, {pipeline_mode = #tpu.pipeline_mode<synchronous>, transform_indices = @transform_3, window_bounds = array<i64: 2, 32, 96>}, {pipeline_mode = #tpu.pipeline_mode<synchronous>, transform_indices = @transform_4, window_bounds = array<i64: 2, 1, 96>}, {pipeline_mode = #tpu.pipeline_mode<synchronous>, transform_indices = @transform_5, window_bounds = array<i64: 2, 32, 32>}, {pipeline_mode = #tpu.pipeline_mode<synchronous>, transform_indices = @transform_6, window_bounds = array<i64: 2, 1, 32>}, {pipeline_mode = #tpu.pipeline_mode<synchronous>, transform_indices = @transform_7, window_bounds = array<i64: 2, 2, 32>}, {pipeline_mode = #tpu.pipeline_mode<synchronous>, transform_indices = @transform_8, window_bounds = array<i64: 2, 32, 64>}, {pipeline_mode = #tpu.pipeline_mode<synchronous>, transform_indices = @transform_9, window_bounds = array<i64: 2, 1, 64>}, {pipeline_mode = #tpu.pipeline_mode<synchronous>, transform_indices = @transform_10, window_bounds = array<i64: 2, 64, 32>}, {pipeline_mode = #tpu.pipeline_mode<synchronous>, transform_indices = @transform_11, window_bounds = array<i64: 2, 1, 32>}, {pipeline_mode = #tpu.pipeline_mode<synchronous>, transform_indices = @transform_12, window_bounds = array<i64: 2, 2, 32>}, {pipeline_mode = #tpu.pipeline_mode<synchronous>, transform_indices = @transform_13, window_bounds = array<i64: 32, 128>}, {pipeline_mode = #tpu.pipeline_mode<synchronous>, transform_indices = @transform_14, window_bounds = array<i64: 1, 128>}, {transform_indices = @transform_15, window_bounds = array<i64: 1, 8, 128>}]} {
    %c0 = arith.constant 0 : index
    %c0_0 = arith.constant 0 : index
    %c0_1 = arith.constant 0 : index
    %0 = vector.load %arg1[%c0, %c0_0, %c0_1] : memref<1x8x32xf32, #tpu.memory_space<vmem>>, vector<1x8x32xf32>
    %1 = vector.shape_cast %0 : vector<1x8x32xf32> to vector<8x32xf32>
    %c0_2 = arith.constant 0 : index
    %c0_3 = arith.constant 0 : index
    %c0_4 = arith.constant 0 : index
    %2 = vector.load %arg2[%c0_2, %c0_3, %c0_4] : memref<1x1x8xf32, #tpu.memory_space<vmem>>, vector<1x1x8xf32>
    %3 = vector.shape_cast %2 : vector<1x1x8xf32> to vector<1x8xf32>
    %cst = arith.constant 0.000000e+00 : f32
    %4 = vector.broadcast %cst : f32 to vector<1x8xf32>
    %5 = arith.cmpf ogt, %3, %4 : vector<1x8xf32>
    %cst_5 = arith.constant 0.000000e+00 : f32
    %cst_6 = arith.constant -1.000000e+09 : f32
    %6 = vector.broadcast %cst_5 : f32 to vector<1x8xf32>
    %7 = vector.broadcast %cst_6 : f32 to vector<1x8xf32>
    %8 = arith.select %5, %6, %7 : vector<1x8xi1>, vector<1x8xf32>
    %c0_7 = arith.constant 0 : index
    %c0_8 = arith.constant 0 : index
    %9 = vector.load %arg3[%c0_7, %c0_8] : memref<2x32xf32, #tpu.memory_space<vmem>>, vector<2x32xf32>
    %10 = vector.extract_strided_slice %9 {offsets = [0, 0], sizes = [1, 32], strides = [1, 1]} : vector<2x32xf32> to vector<1x32xf32>
    %11 = vector.extract_strided_slice %9 {offsets = [1, 0], sizes = [1, 32], strides = [1, 1]} : vector<2x32xf32> to vector<1x32xf32>
    %cst_9 = arith.constant dense<0.000000e+00> : vector<8xf32>
    %12 = vector.multi_reduction <add>, %1, %cst_9 [1] : vector<8x32xf32> to vector<8xf32>
    %13 = vector.shape_cast %12 : vector<8xf32> to vector<8x1xf32>
    %cst_10 = arith.constant 3.200000e+01 : f32
    %14 = vector.broadcast %cst_10 : f32 to vector<8x1xf32>
    %15 = arith.divf %13, %14 : vector<8x1xf32>
    %16 = vector.broadcast %15 : vector<8x1xf32> to vector<8x32xf32>
    %17 = arith.subf %1, %16 : vector<8x32xf32>
    %18 = arith.mulf %17, %17 : vector<8x32xf32>
    %cst_11 = arith.constant dense<0.000000e+00> : vector<8xf32>
    %19 = vector.multi_reduction <add>, %18, %cst_11 [1] : vector<8x32xf32> to vector<8xf32>
    %20 = vector.shape_cast %19 : vector<8xf32> to vector<8x1xf32>
    %cst_12 = arith.constant 3.200000e+01 : f32
    %21 = vector.broadcast %cst_12 : f32 to vector<8x1xf32>
    %22 = arith.divf %20, %21 : vector<8x1xf32>
    %cst_13 = arith.constant 9.99999974E-6 : f32
    %23 = vector.broadcast %cst_13 : f32 to vector<8x1xf32>
    %24 = arith.addf %22, %23 : vector<8x1xf32>
    %25 = math.rsqrt %24 : vector<8x1xf32>
    %26 = vector.broadcast %25 : vector<8x1xf32> to vector<8x32xf32>
    %27 = arith.mulf %17, %26 : vector<8x32xf32>
    %28 = vector.broadcast %10 : vector<1x32xf32> to vector<8x32xf32>
    %29 = arith.mulf %27, %28 : vector<8x32xf32>
    %30 = vector.broadcast %11 : vector<1x32xf32> to vector<8x32xf32>
    %31 = arith.addf %29, %30 : vector<8x32xf32>
    %32 = arith.truncf %31 : vector<8x32xf32> to vector<8x32xbf16>
    %c0_14 = arith.constant 0 : index
    %c0_15 = arith.constant 0 : index
    %c0_16 = arith.constant 0 : index
    %33 = vector.load %arg4[%c0_14, %c0_15, %c0_16] : memref<2x32x96xbf16, #tpu.memory_space<vmem>>, vector<1x32x96xbf16>
    %34 = vector.shape_cast %33 : vector<1x32x96xbf16> to vector<32x96xbf16>
    %cst_17 = arith.constant dense<0.000000e+00> : vector<8x96xf32>
    %35 = tpu.matmul %32, %34, %cst_17 {dimension_numbers = #tpu.dot_dimension_numbers<[1], [0], [0], [1], [0, 0, 1, 1], [], []>} : vector<8x32xbf16>, vector<32x96xbf16>, vector<8x96xf32> -> vector<8x96xf32>
    %c0_18 = arith.constant 0 : index
    %c0_19 = arith.constant 0 : index
    %c0_20 = arith.constant 0 : index
    %36 = vector.load %arg5[%c0_18, %c0_19, %c0_20] : memref<2x1x96xf32, #tpu.memory_space<vmem>>, vector<1x1x96xf32>
    %37 = vector.shape_cast %36 : vector<1x1x96xf32> to vector<1x96xf32>
    %38 = vector.broadcast %37 : vector<1x96xf32> to vector<8x96xf32>
    %39 = arith.addf %35, %38 : vector<8x96xf32>
    %40 = arith.truncf %39 : vector<8x96xf32> to vector<8x96xbf16>
    %41 = vector.extract_strided_slice %40 {offsets = [0, 0], sizes = [8, 24], strides = [1, 1]} : vector<8x96xbf16> to vector<8x24xbf16>
    %42 = vector.extract_strided_slice %41 {offsets = [0, 0], sizes = [8, 8], strides = [1, 1]} : vector<8x24xbf16> to vector<8x8xbf16>
    %43 = vector.extract_strided_slice %41 {offsets = [0, 8], sizes = [8, 8], strides = [1, 1]} : vector<8x24xbf16> to vector<8x8xbf16>
    %44 = vector.extract_strided_slice %41 {offsets = [0, 16], sizes = [8, 8], strides = [1, 1]} : vector<8x24xbf16> to vector<8x8xbf16>
    %cst_21 = arith.constant dense<0.000000e+00> : vector<8x8xf32>
    %45 = tpu.matmul %42, %43, %cst_21 {dimension_numbers = #tpu.dot_dimension_numbers<[1], [1], [0], [0], [0, 0, 1, 0], [], []>} : vector<8x8xbf16>, vector<8x8xbf16>, vector<8x8xf32> -> vector<8x8xf32>
    %cst_22 = arith.constant 0.353553385 : f32
    %46 = vector.broadcast %cst_22 : f32 to vector<8x8xf32>
    %47 = arith.mulf %45, %46 : vector<8x8xf32>
    %48 = vector.broadcast %8 : vector<1x8xf32> to vector<8x8xf32>
    %49 = arith.addf %47, %48 : vector<8x8xf32>
    %cst_23 = arith.constant dense<0xFF800000> : vector<8xf32>
    %50 = vector.multi_reduction <maximumf>, %49, %cst_23 [1] : vector<8x8xf32> to vector<8xf32>
    %51 = vector.shape_cast %50 : vector<8xf32> to vector<8x1xf32>
    %52 = vector.broadcast %51 : vector<8x1xf32> to vector<8x8xf32>
    %53 = arith.subf %49, %52 : vector<8x8xf32>
    %54 = math.exp %53 : vector<8x8xf32>
    %cst_24 = arith.constant dense<0.000000e+00> : vector<8xf32>
    %55 = vector.multi_reduction <add>, %54, %cst_24 [1] : vector<8x8xf32> to vector<8xf32>
    %56 = vector.shape_cast %55 : vector<8xf32> to vector<8x1xf32>
    %57 = tpu.reciprocal %56 {approx = true} : vector<8x1xf32> -> vector<8x1xf32>
    %58 = vector.broadcast %57 : vector<8x1xf32> to vector<8x8xf32>
    %59 = arith.mulf %54, %58 : vector<8x8xf32>
    %60 = arith.truncf %59 : vector<8x8xf32> to vector<8x8xbf16>
    %cst_25 = arith.constant dense<0.000000e+00> : vector<8x8xf32>
    %61 = tpu.matmul %60, %44, %cst_25 {dimension_numbers = #tpu.dot_dimension_numbers<[1], [0], [0], [1], [0, 0, 1, 1], [], []>} : vector<8x8xbf16>, vector<8x8xbf16>, vector<8x8xf32> -> vector<8x8xf32>
    %62 = vector.extract_strided_slice %40 {offsets = [0, 24], sizes = [8, 24], strides = [1, 1]} : vector<8x96xbf16> to vector<8x24xbf16>
    %63 = vector.extract_strided_slice %62 {offsets = [0, 0], sizes = [8, 8], strides = [1, 1]} : vector<8x24xbf16> to vector<8x8xbf16>
    %64 = vector.extract_strided_slice %62 {offsets = [0, 8], sizes = [8, 8], strides = [1, 1]} : vector<8x24xbf16> to vector<8x8xbf16>
    %65 = vector.extract_strided_slice %62 {offsets = [0, 16], sizes = [8, 8], strides = [1, 1]} : vector<8x24xbf16> to vector<8x8xbf16>
    %cst_26 = arith.constant dense<0.000000e+00> : vector<8x8xf32>
    %66 = tpu.matmul %63, %64, %cst_26 {dimension_numbers = #tpu.dot_dimension_numbers<[1], [1], [0], [0], [0, 0, 1, 0], [], []>} : vector<8x8xbf16>, vector<8x8xbf16>, vector<8x8xf32> -> vector<8x8xf32>
    %cst_27 = arith.constant 0.353553385 : f32
    %67 = vector.broadcast %cst_27 : f32 to vector<8x8xf32>
    %68 = arith.mulf %66, %67 : vector<8x8xf32>
    %69 = vector.broadcast %8 : vector<1x8xf32> to vector<8x8xf32>
    %70 = arith.addf %68, %69 : vector<8x8xf32>
    %cst_28 = arith.constant dense<0xFF800000> : vector<8xf32>
    %71 = vector.multi_reduction <maximumf>, %70, %cst_28 [1] : vector<8x8xf32> to vector<8xf32>
    %72 = vector.shape_cast %71 : vector<8xf32> to vector<8x1xf32>
    %73 = vector.broadcast %72 : vector<8x1xf32> to vector<8x8xf32>
    %74 = arith.subf %70, %73 : vector<8x8xf32>
    %75 = math.exp %74 : vector<8x8xf32>
    %cst_29 = arith.constant dense<0.000000e+00> : vector<8xf32>
    %76 = vector.multi_reduction <add>, %75, %cst_29 [1] : vector<8x8xf32> to vector<8xf32>
    %77 = vector.shape_cast %76 : vector<8xf32> to vector<8x1xf32>
    %78 = tpu.reciprocal %77 {approx = true} : vector<8x1xf32> -> vector<8x1xf32>
    %79 = vector.broadcast %78 : vector<8x1xf32> to vector<8x8xf32>
    %80 = arith.mulf %75, %79 : vector<8x8xf32>
    %81 = arith.truncf %80 : vector<8x8xf32> to vector<8x8xbf16>
    %cst_30 = arith.constant dense<0.000000e+00> : vector<8x8xf32>
    %82 = tpu.matmul %81, %65, %cst_30 {dimension_numbers = #tpu.dot_dimension_numbers<[1], [0], [0], [1], [0, 0, 1, 1], [], []>} : vector<8x8xbf16>, vector<8x8xbf16>, vector<8x8xf32> -> vector<8x8xf32>
    %83 = vector.extract_strided_slice %40 {offsets = [0, 48], sizes = [8, 24], strides = [1, 1]} : vector<8x96xbf16> to vector<8x24xbf16>
    %84 = vector.extract_strided_slice %83 {offsets = [0, 0], sizes = [8, 8], strides = [1, 1]} : vector<8x24xbf16> to vector<8x8xbf16>
    %85 = vector.extract_strided_slice %83 {offsets = [0, 8], sizes = [8, 8], strides = [1, 1]} : vector<8x24xbf16> to vector<8x8xbf16>
    %86 = vector.extract_strided_slice %83 {offsets = [0, 16], sizes = [8, 8], strides = [1, 1]} : vector<8x24xbf16> to vector<8x8xbf16>
    %cst_31 = arith.constant dense<0.000000e+00> : vector<8x8xf32>
    %87 = tpu.matmul %84, %85, %cst_31 {dimension_numbers = #tpu.dot_dimension_numbers<[1], [1], [0], [0], [0, 0, 1, 0], [], []>} : vector<8x8xbf16>, vector<8x8xbf16>, vector<8x8xf32> -> vector<8x8xf32>
    %cst_32 = arith.constant 0.353553385 : f32
    %88 = vector.broadcast %cst_32 : f32 to vector<8x8xf32>
    %89 = arith.mulf %87, %88 : vector<8x8xf32>
    %90 = vector.broadcast %8 : vector<1x8xf32> to vector<8x8xf32>
    %91 = arith.addf %89, %90 : vector<8x8xf32>
    %cst_33 = arith.constant dense<0xFF800000> : vector<8xf32>
    %92 = vector.multi_reduction <maximumf>, %91, %cst_33 [1] : vector<8x8xf32> to vector<8xf32>
    %93 = vector.shape_cast %92 : vector<8xf32> to vector<8x1xf32>
    %94 = vector.broadcast %93 : vector<8x1xf32> to vector<8x8xf32>
    %95 = arith.subf %91, %94 : vector<8x8xf32>
    %96 = math.exp %95 : vector<8x8xf32>
    %cst_34 = arith.constant dense<0.000000e+00> : vector<8xf32>
    %97 = vector.multi_reduction <add>, %96, %cst_34 [1] : vector<8x8xf32> to vector<8xf32>
    %98 = vector.shape_cast %97 : vector<8xf32> to vector<8x1xf32>
    %99 = tpu.reciprocal %98 {approx = true} : vector<8x1xf32> -> vector<8x1xf32>
    %100 = vector.broadcast %99 : vector<8x1xf32> to vector<8x8xf32>
    %101 = arith.mulf %96, %100 : vector<8x8xf32>
    %102 = arith.truncf %101 : vector<8x8xf32> to vector<8x8xbf16>
    %cst_35 = arith.constant dense<0.000000e+00> : vector<8x8xf32>
    %103 = tpu.matmul %102, %86, %cst_35 {dimension_numbers = #tpu.dot_dimension_numbers<[1], [0], [0], [1], [0, 0, 1, 1], [], []>} : vector<8x8xbf16>, vector<8x8xbf16>, vector<8x8xf32> -> vector<8x8xf32>
    %104 = vector.extract_strided_slice %40 {offsets = [0, 72], sizes = [8, 24], strides = [1, 1]} : vector<8x96xbf16> to vector<8x24xbf16>
    %105 = vector.extract_strided_slice %104 {offsets = [0, 0], sizes = [8, 8], strides = [1, 1]} : vector<8x24xbf16> to vector<8x8xbf16>
    %106 = vector.extract_strided_slice %104 {offsets = [0, 8], sizes = [8, 8], strides = [1, 1]} : vector<8x24xbf16> to vector<8x8xbf16>
    %107 = vector.extract_strided_slice %104 {offsets = [0, 16], sizes = [8, 8], strides = [1, 1]} : vector<8x24xbf16> to vector<8x8xbf16>
    %cst_36 = arith.constant dense<0.000000e+00> : vector<8x8xf32>
    %108 = tpu.matmul %105, %106, %cst_36 {dimension_numbers = #tpu.dot_dimension_numbers<[1], [1], [0], [0], [0, 0, 1, 0], [], []>} : vector<8x8xbf16>, vector<8x8xbf16>, vector<8x8xf32> -> vector<8x8xf32>
    %cst_37 = arith.constant 0.353553385 : f32
    %109 = vector.broadcast %cst_37 : f32 to vector<8x8xf32>
    %110 = arith.mulf %108, %109 : vector<8x8xf32>
    %111 = vector.broadcast %8 : vector<1x8xf32> to vector<8x8xf32>
    %112 = arith.addf %110, %111 : vector<8x8xf32>
    %cst_38 = arith.constant dense<0xFF800000> : vector<8xf32>
    %113 = vector.multi_reduction <maximumf>, %112, %cst_38 [1] : vector<8x8xf32> to vector<8xf32>
    %114 = vector.shape_cast %113 : vector<8xf32> to vector<8x1xf32>
    %115 = vector.broadcast %114 : vector<8x1xf32> to vector<8x8xf32>
    %116 = arith.subf %112, %115 : vector<8x8xf32>
    %117 = math.exp %116 : vector<8x8xf32>
    %cst_39 = arith.constant dense<0.000000e+00> : vector<8xf32>
    %118 = vector.multi_reduction <add>, %117, %cst_39 [1] : vector<8x8xf32> to vector<8xf32>
    %119 = vector.shape_cast %118 : vector<8xf32> to vector<8x1xf32>
    %120 = tpu.reciprocal %119 {approx = true} : vector<8x1xf32> -> vector<8x1xf32>
    %121 = vector.broadcast %120 : vector<8x1xf32> to vector<8x8xf32>
    %122 = arith.mulf %117, %121 : vector<8x8xf32>
    %123 = arith.truncf %122 : vector<8x8xf32> to vector<8x8xbf16>
    %cst_40 = arith.constant dense<0.000000e+00> : vector<8x8xf32>
    %124 = tpu.matmul %123, %107, %cst_40 {dimension_numbers = #tpu.dot_dimension_numbers<[1], [0], [0], [1], [0, 0, 1, 1], [], []>} : vector<8x8xbf16>, vector<8x8xbf16>, vector<8x8xf32> -> vector<8x8xf32>
    %125 = tpu.concatenate %61, %82, %103, %124 in 1 : vector<8x8xf32>, vector<8x8xf32>, vector<8x8xf32>, vector<8x8xf32> -> vector<8x32xf32>
    %126 = arith.truncf %125 : vector<8x32xf32> to vector<8x32xbf16>
    %c0_41 = arith.constant 0 : index
    %c0_42 = arith.constant 0 : index
    %c0_43 = arith.constant 0 : index
    %127 = vector.load %arg6[%c0_41, %c0_42, %c0_43] : memref<2x32x32xbf16, #tpu.memory_space<vmem>>, vector<1x32x32xbf16>
    %128 = vector.shape_cast %127 : vector<1x32x32xbf16> to vector<32x32xbf16>
    %cst_44 = arith.constant dense<0.000000e+00> : vector<8x32xf32>
    %129 = tpu.matmul %126, %128, %cst_44 {dimension_numbers = #tpu.dot_dimension_numbers<[1], [0], [0], [1], [0, 0, 1, 1], [], []>} : vector<8x32xbf16>, vector<32x32xbf16>, vector<8x32xf32> -> vector<8x32xf32>
    %c0_45 = arith.constant 0 : index
    %c0_46 = arith.constant 0 : index
    %c0_47 = arith.constant 0 : index
    %130 = vector.load %arg7[%c0_45, %c0_46, %c0_47] : memref<2x1x32xf32, #tpu.memory_space<vmem>>, vector<1x1x32xf32>
    %131 = vector.shape_cast %130 : vector<1x1x32xf32> to vector<1x32xf32>
    %132 = vector.broadcast %131 : vector<1x32xf32> to vector<8x32xf32>
    %133 = arith.addf %129, %132 : vector<8x32xf32>
    %134 = arith.addf %133, %31 : vector<8x32xf32>
    %c0_48 = arith.constant 0 : index
    %c0_49 = arith.constant 0 : index
    %c0_50 = arith.constant 0 : index
    %135 = vector.load %arg8[%c0_48, %c0_49, %c0_50] : memref<2x2x32xf32, #tpu.memory_space<vmem>>, vector<1x2x32xf32>
    %136 = vector.shape_cast %135 : vector<1x2x32xf32> to vector<2x32xf32>
    %137 = vector.extract_strided_slice %136 {offsets = [0, 0], sizes = [1, 32], strides = [1, 1]} : vector<2x32xf32> to vector<1x32xf32>
    %138 = vector.extract_strided_slice %136 {offsets = [1, 0], sizes = [1, 32], strides = [1, 1]} : vector<2x32xf32> to vector<1x32xf32>
    %cst_51 = arith.constant dense<0.000000e+00> : vector<8xf32>
    %139 = vector.multi_reduction <add>, %134, %cst_51 [1] : vector<8x32xf32> to vector<8xf32>
    %140 = vector.shape_cast %139 : vector<8xf32> to vector<8x1xf32>
    %cst_52 = arith.constant 3.200000e+01 : f32
    %141 = vector.broadcast %cst_52 : f32 to vector<8x1xf32>
    %142 = arith.divf %140, %141 : vector<8x1xf32>
    %143 = vector.broadcast %142 : vector<8x1xf32> to vector<8x32xf32>
    %144 = arith.subf %134, %143 : vector<8x32xf32>
    %145 = arith.mulf %144, %144 : vector<8x32xf32>
    %cst_53 = arith.constant dense<0.000000e+00> : vector<8xf32>
    %146 = vector.multi_reduction <add>, %145, %cst_53 [1] : vector<8x32xf32> to vector<8xf32>
    %147 = vector.shape_cast %146 : vector<8xf32> to vector<8x1xf32>
    %cst_54 = arith.constant 3.200000e+01 : f32
    %148 = vector.broadcast %cst_54 : f32 to vector<8x1xf32>
    %149 = arith.divf %147, %148 : vector<8x1xf32>
    %cst_55 = arith.constant 9.99999974E-6 : f32
    %150 = vector.broadcast %cst_55 : f32 to vector<8x1xf32>
    %151 = arith.addf %149, %150 : vector<8x1xf32>
    %152 = math.rsqrt %151 : vector<8x1xf32>
    %153 = vector.broadcast %152 : vector<8x1xf32> to vector<8x32xf32>
    %154 = arith.mulf %144, %153 : vector<8x32xf32>
    %155 = vector.broadcast %137 : vector<1x32xf32> to vector<8x32xf32>
    %156 = arith.mulf %154, %155 : vector<8x32xf32>
    %157 = vector.broadcast %138 : vector<1x32xf32> to vector<8x32xf32>
    %158 = arith.addf %156, %157 : vector<8x32xf32>
    %159 = arith.truncf %158 : vector<8x32xf32> to vector<8x32xbf16>
    %c0_56 = arith.constant 0 : index
    %c0_57 = arith.constant 0 : index
    %c0_58 = arith.constant 0 : index
    %160 = vector.load %arg9[%c0_56, %c0_57, %c0_58] : memref<2x32x64xbf16, #tpu.memory_space<vmem>>, vector<1x32x64xbf16>
    %161 = vector.shape_cast %160 : vector<1x32x64xbf16> to vector<32x64xbf16>
    %cst_59 = arith.constant dense<0.000000e+00> : vector<8x64xf32>
    %162 = tpu.matmul %159, %161, %cst_59 {dimension_numbers = #tpu.dot_dimension_numbers<[1], [0], [0], [1], [0, 0, 1, 1], [], []>} : vector<8x32xbf16>, vector<32x64xbf16>, vector<8x64xf32> -> vector<8x64xf32>
    %c0_60 = arith.constant 0 : index
    %c0_61 = arith.constant 0 : index
    %c0_62 = arith.constant 0 : index
    %163 = vector.load %arg10[%c0_60, %c0_61, %c0_62] : memref<2x1x64xf32, #tpu.memory_space<vmem>>, vector<1x1x64xf32>
    %164 = vector.shape_cast %163 : vector<1x1x64xf32> to vector<1x64xf32>
    %165 = vector.broadcast %164 : vector<1x64xf32> to vector<8x64xf32>
    %166 = arith.addf %162, %165 : vector<8x64xf32>
    %cst_63 = arith.constant 5.000000e-01 : f32
    %167 = vector.broadcast %cst_63 : f32 to vector<8x64xf32>
    %168 = arith.mulf %167, %166 : vector<8x64xf32>
    %cst_64 = arith.constant 0.707106769 : f32
    %169 = vector.broadcast %cst_64 : f32 to vector<8x64xf32>
    %170 = arith.mulf %166, %169 : vector<8x64xf32>
    %171 = math.erf %170 : vector<8x64xf32>
    %cst_65 = arith.constant 1.000000e+00 : f32
    %172 = vector.broadcast %cst_65 : f32 to vector<8x64xf32>
    %173 = arith.addf %172, %171 : vector<8x64xf32>
    %174 = arith.mulf %168, %173 : vector<8x64xf32>
    %175 = arith.truncf %174 : vector<8x64xf32> to vector<8x64xbf16>
    %c0_66 = arith.constant 0 : index
    %c0_67 = arith.constant 0 : index
    %c0_68 = arith.constant 0 : index
    %176 = vector.load %arg11[%c0_66, %c0_67, %c0_68] : memref<2x64x32xbf16, #tpu.memory_space<vmem>>, vector<1x64x32xbf16>
    %177 = vector.shape_cast %176 : vector<1x64x32xbf16> to vector<64x32xbf16>
    %cst_69 = arith.constant dense<0.000000e+00> : vector<8x32xf32>
    %178 = tpu.matmul %175, %177, %cst_69 {dimension_numbers = #tpu.dot_dimension_numbers<[1], [0], [0], [1], [0, 0, 1, 1], [], []>} : vector<8x64xbf16>, vector<64x32xbf16>, vector<8x32xf32> -> vector<8x32xf32>
    %c0_70 = arith.constant 0 : index
    %c0_71 = arith.constant 0 : index
    %c0_72 = arith.constant 0 : index
    %179 = vector.load %arg12[%c0_70, %c0_71, %c0_72] : memref<2x1x32xf32, #tpu.memory_space<vmem>>, vector<1x1x32xf32>
    %180 = vector.shape_cast %179 : vector<1x1x32xf32> to vector<1x32xf32>
    %181 = vector.broadcast %180 : vector<1x32xf32> to vector<8x32xf32>
    %182 = arith.addf %178, %181 : vector<8x32xf32>
    %183 = arith.addf %182, %158 : vector<8x32xf32>
    %c0_73 = arith.constant 0 : index
    %c0_74 = arith.constant 0 : index
    %c0_75 = arith.constant 0 : index
    %184 = vector.load %arg13[%c0_73, %c0_74, %c0_75] : memref<2x2x32xf32, #tpu.memory_space<vmem>>, vector<1x2x32xf32>
    %185 = vector.shape_cast %184 : vector<1x2x32xf32> to vector<2x32xf32>
    %186 = vector.extract_strided_slice %185 {offsets = [0, 0], sizes = [1, 32], strides = [1, 1]} : vector<2x32xf32> to vector<1x32xf32>
    %187 = vector.extract_strided_slice %185 {offsets = [1, 0], sizes = [1, 32], strides = [1, 1]} : vector<2x32xf32> to vector<1x32xf32>
    %cst_76 = arith.constant dense<0.000000e+00> : vector<8xf32>
    %188 = vector.multi_reduction <add>, %183, %cst_76 [1] : vector<8x32xf32> to vector<8xf32>
    %189 = vector.shape_cast %188 : vector<8xf32> to vector<8x1xf32>
    %cst_77 = arith.constant 3.200000e+01 : f32
    %190 = vector.broadcast %cst_77 : f32 to vector<8x1xf32>
    %191 = arith.divf %189, %190 : vector<8x1xf32>
    %192 = vector.broadcast %191 : vector<8x1xf32> to vector<8x32xf32>
    %193 = arith.subf %183, %192 : vector<8x32xf32>
    %194 = arith.mulf %193, %193 : vector<8x32xf32>
    %cst_78 = arith.constant dense<0.000000e+00> : vector<8xf32>
    %195 = vector.multi_reduction <add>, %194, %cst_78 [1] : vector<8x32xf32> to vector<8xf32>
    %196 = vector.shape_cast %195 : vector<8xf32> to vector<8x1xf32>
    %cst_79 = arith.constant 3.200000e+01 : f32
    %197 = vector.broadcast %cst_79 : f32 to vector<8x1xf32>
    %198 = arith.divf %196, %197 : vector<8x1xf32>
    %cst_80 = arith.constant 9.99999974E-6 : f32
    %199 = vector.broadcast %cst_80 : f32 to vector<8x1xf32>
    %200 = arith.addf %198, %199 : vector<8x1xf32>
    %201 = math.rsqrt %200 : vector<8x1xf32>
    %202 = vector.broadcast %201 : vector<8x1xf32> to vector<8x32xf32>
    %203 = arith.mulf %193, %202 : vector<8x32xf32>
    %204 = vector.broadcast %186 : vector<1x32xf32> to vector<8x32xf32>
    %205 = arith.mulf %203, %204 : vector<8x32xf32>
    %206 = vector.broadcast %187 : vector<1x32xf32> to vector<8x32xf32>
    %207 = arith.addf %205, %206 : vector<8x32xf32>
    %208 = arith.truncf %207 : vector<8x32xf32> to vector<8x32xbf16>
    %c1 = arith.constant 1 : index
    %c0_81 = arith.constant 0 : index
    %c0_82 = arith.constant 0 : index
    %209 = vector.load %arg4[%c1, %c0_81, %c0_82] : memref<2x32x96xbf16, #tpu.memory_space<vmem>>, vector<1x32x96xbf16>
    %210 = vector.shape_cast %209 : vector<1x32x96xbf16> to vector<32x96xbf16>
    %cst_83 = arith.constant dense<0.000000e+00> : vector<8x96xf32>
    %211 = tpu.matmul %208, %210, %cst_83 {dimension_numbers = #tpu.dot_dimension_numbers<[1], [0], [0], [1], [0, 0, 1, 1], [], []>} : vector<8x32xbf16>, vector<32x96xbf16>, vector<8x96xf32> -> vector<8x96xf32>
    %c1_84 = arith.constant 1 : index
    %c0_85 = arith.constant 0 : index
    %c0_86 = arith.constant 0 : index
    %212 = vector.load %arg5[%c1_84, %c0_85, %c0_86] : memref<2x1x96xf32, #tpu.memory_space<vmem>>, vector<1x1x96xf32>
    %213 = vector.shape_cast %212 : vector<1x1x96xf32> to vector<1x96xf32>
    %214 = vector.broadcast %213 : vector<1x96xf32> to vector<8x96xf32>
    %215 = arith.addf %211, %214 : vector<8x96xf32>
    %216 = arith.truncf %215 : vector<8x96xf32> to vector<8x96xbf16>
    %217 = vector.extract_strided_slice %216 {offsets = [0, 0], sizes = [8, 24], strides = [1, 1]} : vector<8x96xbf16> to vector<8x24xbf16>
    %218 = vector.extract_strided_slice %217 {offsets = [0, 0], sizes = [8, 8], strides = [1, 1]} : vector<8x24xbf16> to vector<8x8xbf16>
    %219 = vector.extract_strided_slice %217 {offsets = [0, 8], sizes = [8, 8], strides = [1, 1]} : vector<8x24xbf16> to vector<8x8xbf16>
    %220 = vector.extract_strided_slice %217 {offsets = [0, 16], sizes = [8, 8], strides = [1, 1]} : vector<8x24xbf16> to vector<8x8xbf16>
    %cst_87 = arith.constant dense<0.000000e+00> : vector<8x8xf32>
    %221 = tpu.matmul %218, %219, %cst_87 {dimension_numbers = #tpu.dot_dimension_numbers<[1], [1], [0], [0], [0, 0, 1, 0], [], []>} : vector<8x8xbf16>, vector<8x8xbf16>, vector<8x8xf32> -> vector<8x8xf32>
    %cst_88 = arith.constant 0.353553385 : f32
    %222 = vector.broadcast %cst_88 : f32 to vector<8x8xf32>
    %223 = arith.mulf %221, %222 : vector<8x8xf32>
    %224 = vector.broadcast %8 : vector<1x8xf32> to vector<8x8xf32>
    %225 = arith.addf %223, %224 : vector<8x8xf32>
    %cst_89 = arith.constant dense<0xFF800000> : vector<8xf32>
    %226 = vector.multi_reduction <maximumf>, %225, %cst_89 [1] : vector<8x8xf32> to vector<8xf32>
    %227 = vector.shape_cast %226 : vector<8xf32> to vector<8x1xf32>
    %228 = vector.broadcast %227 : vector<8x1xf32> to vector<8x8xf32>
    %229 = arith.subf %225, %228 : vector<8x8xf32>
    %230 = math.exp %229 : vector<8x8xf32>
    %cst_90 = arith.constant dense<0.000000e+00> : vector<8xf32>
    %231 = vector.multi_reduction <add>, %230, %cst_90 [1] : vector<8x8xf32> to vector<8xf32>
    %232 = vector.shape_cast %231 : vector<8xf32> to vector<8x1xf32>
    %233 = tpu.reciprocal %232 {approx = true} : vector<8x1xf32> -> vector<8x1xf32>
    %234 = vector.broadcast %233 : vector<8x1xf32> to vector<8x8xf32>
    %235 = arith.mulf %230, %234 : vector<8x8xf32>
    %236 = arith.truncf %235 : vector<8x8xf32> to vector<8x8xbf16>
    %cst_91 = arith.constant dense<0.000000e+00> : vector<8x8xf32>
    %237 = tpu.matmul %236, %220, %cst_91 {dimension_numbers = #tpu.dot_dimension_numbers<[1], [0], [0], [1], [0, 0, 1, 1], [], []>} : vector<8x8xbf16>, vector<8x8xbf16>, vector<8x8xf32> -> vector<8x8xf32>
    %238 = vector.extract_strided_slice %216 {offsets = [0, 24], sizes = [8, 24], strides = [1, 1]} : vector<8x96xbf16> to vector<8x24xbf16>
    %239 = vector.extract_strided_slice %238 {offsets = [0, 0], sizes = [8, 8], strides = [1, 1]} : vector<8x24xbf16> to vector<8x8xbf16>
    %240 = vector.extract_strided_slice %238 {offsets = [0, 8], sizes = [8, 8], strides = [1, 1]} : vector<8x24xbf16> to vector<8x8xbf16>
    %241 = vector.extract_strided_slice %238 {offsets = [0, 16], sizes = [8, 8], strides = [1, 1]} : vector<8x24xbf16> to vector<8x8xbf16>
    %cst_92 = arith.constant dense<0.000000e+00> : vector<8x8xf32>
    %242 = tpu.matmul %239, %240, %cst_92 {dimension_numbers = #tpu.dot_dimension_numbers<[1], [1], [0], [0], [0, 0, 1, 0], [], []>} : vector<8x8xbf16>, vector<8x8xbf16>, vector<8x8xf32> -> vector<8x8xf32>
    %cst_93 = arith.constant 0.353553385 : f32
    %243 = vector.broadcast %cst_93 : f32 to vector<8x8xf32>
    %244 = arith.mulf %242, %243 : vector<8x8xf32>
    %245 = vector.broadcast %8 : vector<1x8xf32> to vector<8x8xf32>
    %246 = arith.addf %244, %245 : vector<8x8xf32>
    %cst_94 = arith.constant dense<0xFF800000> : vector<8xf32>
    %247 = vector.multi_reduction <maximumf>, %246, %cst_94 [1] : vector<8x8xf32> to vector<8xf32>
    %248 = vector.shape_cast %247 : vector<8xf32> to vector<8x1xf32>
    %249 = vector.broadcast %248 : vector<8x1xf32> to vector<8x8xf32>
    %250 = arith.subf %246, %249 : vector<8x8xf32>
    %251 = math.exp %250 : vector<8x8xf32>
    %cst_95 = arith.constant dense<0.000000e+00> : vector<8xf32>
    %252 = vector.multi_reduction <add>, %251, %cst_95 [1] : vector<8x8xf32> to vector<8xf32>
    %253 = vector.shape_cast %252 : vector<8xf32> to vector<8x1xf32>
    %254 = tpu.reciprocal %253 {approx = true} : vector<8x1xf32> -> vector<8x1xf32>
    %255 = vector.broadcast %254 : vector<8x1xf32> to vector<8x8xf32>
    %256 = arith.mulf %251, %255 : vector<8x8xf32>
    %257 = arith.truncf %256 : vector<8x8xf32> to vector<8x8xbf16>
    %cst_96 = arith.constant dense<0.000000e+00> : vector<8x8xf32>
    %258 = tpu.matmul %257, %241, %cst_96 {dimension_numbers = #tpu.dot_dimension_numbers<[1], [0], [0], [1], [0, 0, 1, 1], [], []>} : vector<8x8xbf16>, vector<8x8xbf16>, vector<8x8xf32> -> vector<8x8xf32>
    %259 = vector.extract_strided_slice %216 {offsets = [0, 48], sizes = [8, 24], strides = [1, 1]} : vector<8x96xbf16> to vector<8x24xbf16>
    %260 = vector.extract_strided_slice %259 {offsets = [0, 0], sizes = [8, 8], strides = [1, 1]} : vector<8x24xbf16> to vector<8x8xbf16>
    %261 = vector.extract_strided_slice %259 {offsets = [0, 8], sizes = [8, 8], strides = [1, 1]} : vector<8x24xbf16> to vector<8x8xbf16>
    %262 = vector.extract_strided_slice %259 {offsets = [0, 16], sizes = [8, 8], strides = [1, 1]} : vector<8x24xbf16> to vector<8x8xbf16>
    %cst_97 = arith.constant dense<0.000000e+00> : vector<8x8xf32>
    %263 = tpu.matmul %260, %261, %cst_97 {dimension_numbers = #tpu.dot_dimension_numbers<[1], [1], [0], [0], [0, 0, 1, 0], [], []>} : vector<8x8xbf16>, vector<8x8xbf16>, vector<8x8xf32> -> vector<8x8xf32>
    %cst_98 = arith.constant 0.353553385 : f32
    %264 = vector.broadcast %cst_98 : f32 to vector<8x8xf32>
    %265 = arith.mulf %263, %264 : vector<8x8xf32>
    %266 = vector.broadcast %8 : vector<1x8xf32> to vector<8x8xf32>
    %267 = arith.addf %265, %266 : vector<8x8xf32>
    %cst_99 = arith.constant dense<0xFF800000> : vector<8xf32>
    %268 = vector.multi_reduction <maximumf>, %267, %cst_99 [1] : vector<8x8xf32> to vector<8xf32>
    %269 = vector.shape_cast %268 : vector<8xf32> to vector<8x1xf32>
    %270 = vector.broadcast %269 : vector<8x1xf32> to vector<8x8xf32>
    %271 = arith.subf %267, %270 : vector<8x8xf32>
    %272 = math.exp %271 : vector<8x8xf32>
    %cst_100 = arith.constant dense<0.000000e+00> : vector<8xf32>
    %273 = vector.multi_reduction <add>, %272, %cst_100 [1] : vector<8x8xf32> to vector<8xf32>
    %274 = vector.shape_cast %273 : vector<8xf32> to vector<8x1xf32>
    %275 = tpu.reciprocal %274 {approx = true} : vector<8x1xf32> -> vector<8x1xf32>
    %276 = vector.broadcast %275 : vector<8x1xf32> to vector<8x8xf32>
    %277 = arith.mulf %272, %276 : vector<8x8xf32>
    %278 = arith.truncf %277 : vector<8x8xf32> to vector<8x8xbf16>
    %cst_101 = arith.constant dense<0.000000e+00> : vector<8x8xf32>
    %279 = tpu.matmul %278, %262, %cst_101 {dimension_numbers = #tpu.dot_dimension_numbers<[1], [0], [0], [1], [0, 0, 1, 1], [], []>} : vector<8x8xbf16>, vector<8x8xbf16>, vector<8x8xf32> -> vector<8x8xf32>
    %280 = vector.extract_strided_slice %216 {offsets = [0, 72], sizes = [8, 24], strides = [1, 1]} : vector<8x96xbf16> to vector<8x24xbf16>
    %281 = vector.extract_strided_slice %280 {offsets = [0, 0], sizes = [8, 8], strides = [1, 1]} : vector<8x24xbf16> to vector<8x8xbf16>
    %282 = vector.extract_strided_slice %280 {offsets = [0, 8], sizes = [8, 8], strides = [1, 1]} : vector<8x24xbf16> to vector<8x8xbf16>
    %283 = vector.extract_strided_slice %280 {offsets = [0, 16], sizes = [8, 8], strides = [1, 1]} : vector<8x24xbf16> to vector<8x8xbf16>
    %cst_102 = arith.constant dense<0.000000e+00> : vector<8x8xf32>
    %284 = tpu.matmul %281, %282, %cst_102 {dimension_numbers = #tpu.dot_dimension_numbers<[1], [1], [0], [0], [0, 0, 1, 0], [], []>} : vector<8x8xbf16>, vector<8x8xbf16>, vector<8x8xf32> -> vector<8x8xf32>
    %cst_103 = arith.constant 0.353553385 : f32
    %285 = vector.broadcast %cst_103 : f32 to vector<8x8xf32>
    %286 = arith.mulf %284, %285 : vector<8x8xf32>
    %287 = vector.broadcast %8 : vector<1x8xf32> to vector<8x8xf32>
    %288 = arith.addf %286, %287 : vector<8x8xf32>
    %cst_104 = arith.constant dense<0xFF800000> : vector<8xf32>
    %289 = vector.multi_reduction <maximumf>, %288, %cst_104 [1] : vector<8x8xf32> to vector<8xf32>
    %290 = vector.shape_cast %289 : vector<8xf32> to vector<8x1xf32>
    %291 = vector.broadcast %290 : vector<8x1xf32> to vector<8x8xf32>
    %292 = arith.subf %288, %291 : vector<8x8xf32>
    %293 = math.exp %292 : vector<8x8xf32>
    %cst_105 = arith.constant dense<0.000000e+00> : vector<8xf32>
    %294 = vector.multi_reduction <add>, %293, %cst_105 [1] : vector<8x8xf32> to vector<8xf32>
    %295 = vector.shape_cast %294 : vector<8xf32> to vector<8x1xf32>
    %296 = tpu.reciprocal %295 {approx = true} : vector<8x1xf32> -> vector<8x1xf32>
    %297 = vector.broadcast %296 : vector<8x1xf32> to vector<8x8xf32>
    %298 = arith.mulf %293, %297 : vector<8x8xf32>
    %299 = arith.truncf %298 : vector<8x8xf32> to vector<8x8xbf16>
    %cst_106 = arith.constant dense<0.000000e+00> : vector<8x8xf32>
    %300 = tpu.matmul %299, %283, %cst_106 {dimension_numbers = #tpu.dot_dimension_numbers<[1], [0], [0], [1], [0, 0, 1, 1], [], []>} : vector<8x8xbf16>, vector<8x8xbf16>, vector<8x8xf32> -> vector<8x8xf32>
    %301 = tpu.concatenate %237, %258, %279, %300 in 1 : vector<8x8xf32>, vector<8x8xf32>, vector<8x8xf32>, vector<8x8xf32> -> vector<8x32xf32>
    %302 = arith.truncf %301 : vector<8x32xf32> to vector<8x32xbf16>
    %c1_107 = arith.constant 1 : index
    %c0_108 = arith.constant 0 : index
    %c0_109 = arith.constant 0 : index
    %303 = vector.load %arg6[%c1_107, %c0_108, %c0_109] : memref<2x32x32xbf16, #tpu.memory_space<vmem>>, vector<1x32x32xbf16>
    %304 = vector.shape_cast %303 : vector<1x32x32xbf16> to vector<32x32xbf16>
    %cst_110 = arith.constant dense<0.000000e+00> : vector<8x32xf32>
    %305 = tpu.matmul %302, %304, %cst_110 {dimension_numbers = #tpu.dot_dimension_numbers<[1], [0], [0], [1], [0, 0, 1, 1], [], []>} : vector<8x32xbf16>, vector<32x32xbf16>, vector<8x32xf32> -> vector<8x32xf32>
    %c1_111 = arith.constant 1 : index
    %c0_112 = arith.constant 0 : index
    %c0_113 = arith.constant 0 : index
    %306 = vector.load %arg7[%c1_111, %c0_112, %c0_113] : memref<2x1x32xf32, #tpu.memory_space<vmem>>, vector<1x1x32xf32>
    %307 = vector.shape_cast %306 : vector<1x1x32xf32> to vector<1x32xf32>
    %308 = vector.broadcast %307 : vector<1x32xf32> to vector<8x32xf32>
    %309 = arith.addf %305, %308 : vector<8x32xf32>
    %310 = arith.addf %309, %207 : vector<8x32xf32>
    %c1_114 = arith.constant 1 : index
    %c0_115 = arith.constant 0 : index
    %c0_116 = arith.constant 0 : index
    %311 = vector.load %arg8[%c1_114, %c0_115, %c0_116] : memref<2x2x32xf32, #tpu.memory_space<vmem>>, vector<1x2x32xf32>
    %312 = vector.shape_cast %311 : vector<1x2x32xf32> to vector<2x32xf32>
    %313 = vector.extract_strided_slice %312 {offsets = [0, 0], sizes = [1, 32], strides = [1, 1]} : vector<2x32xf32> to vector<1x32xf32>
    %314 = vector.extract_strided_slice %312 {offsets = [1, 0], sizes = [1, 32], strides = [1, 1]} : vector<2x32xf32> to vector<1x32xf32>
    %cst_117 = arith.constant dense<0.000000e+00> : vector<8xf32>
    %315 = vector.multi_reduction <add>, %310, %cst_117 [1] : vector<8x32xf32> to vector<8xf32>
    %316 = vector.shape_cast %315 : vector<8xf32> to vector<8x1xf32>
    %cst_118 = arith.constant 3.200000e+01 : f32
    %317 = vector.broadcast %cst_118 : f32 to vector<8x1xf32>
    %318 = arith.divf %316, %317 : vector<8x1xf32>
    %319 = vector.broadcast %318 : vector<8x1xf32> to vector<8x32xf32>
    %320 = arith.subf %310, %319 : vector<8x32xf32>
    %321 = arith.mulf %320, %320 : vector<8x32xf32>
    %cst_119 = arith.constant dense<0.000000e+00> : vector<8xf32>
    %322 = vector.multi_reduction <add>, %321, %cst_119 [1] : vector<8x32xf32> to vector<8xf32>
    %323 = vector.shape_cast %322 : vector<8xf32> to vector<8x1xf32>
    %cst_120 = arith.constant 3.200000e+01 : f32
    %324 = vector.broadcast %cst_120 : f32 to vector<8x1xf32>
    %325 = arith.divf %323, %324 : vector<8x1xf32>
    %cst_121 = arith.constant 9.99999974E-6 : f32
    %326 = vector.broadcast %cst_121 : f32 to vector<8x1xf32>
    %327 = arith.addf %325, %326 : vector<8x1xf32>
    %328 = math.rsqrt %327 : vector<8x1xf32>
    %329 = vector.broadcast %328 : vector<8x1xf32> to vector<8x32xf32>
    %330 = arith.mulf %320, %329 : vector<8x32xf32>
    %331 = vector.broadcast %313 : vector<1x32xf32> to vector<8x32xf32>
    %332 = arith.mulf %330, %331 : vector<8x32xf32>
    %333 = vector.broadcast %314 : vector<1x32xf32> to vector<8x32xf32>
    %334 = arith.addf %332, %333 : vector<8x32xf32>
    %335 = arith.truncf %334 : vector<8x32xf32> to vector<8x32xbf16>
    %c1_122 = arith.constant 1 : index
    %c0_123 = arith.constant 0 : index
    %c0_124 = arith.constant 0 : index
    %336 = vector.load %arg9[%c1_122, %c0_123, %c0_124] : memref<2x32x64xbf16, #tpu.memory_space<vmem>>, vector<1x32x64xbf16>
    %337 = vector.shape_cast %336 : vector<1x32x64xbf16> to vector<32x64xbf16>
    %cst_125 = arith.constant dense<0.000000e+00> : vector<8x64xf32>
    %338 = tpu.matmul %335, %337, %cst_125 {dimension_numbers = #tpu.dot_dimension_numbers<[1], [0], [0], [1], [0, 0, 1, 1], [], []>} : vector<8x32xbf16>, vector<32x64xbf16>, vector<8x64xf32> -> vector<8x64xf32>
    %c1_126 = arith.constant 1 : index
    %c0_127 = arith.constant 0 : index
    %c0_128 = arith.constant 0 : index
    %339 = vector.load %arg10[%c1_126, %c0_127, %c0_128] : memref<2x1x64xf32, #tpu.memory_space<vmem>>, vector<1x1x64xf32>
    %340 = vector.shape_cast %339 : vector<1x1x64xf32> to vector<1x64xf32>
    %341 = vector.broadcast %340 : vector<1x64xf32> to vector<8x64xf32>
    %342 = arith.addf %338, %341 : vector<8x64xf32>
    %cst_129 = arith.constant 5.000000e-01 : f32
    %343 = vector.broadcast %cst_129 : f32 to vector<8x64xf32>
    %344 = arith.mulf %343, %342 : vector<8x64xf32>
    %cst_130 = arith.constant 0.707106769 : f32
    %345 = vector.broadcast %cst_130 : f32 to vector<8x64xf32>
    %346 = arith.mulf %342, %345 : vector<8x64xf32>
    %347 = math.erf %346 : vector<8x64xf32>
    %cst_131 = arith.constant 1.000000e+00 : f32
    %348 = vector.broadcast %cst_131 : f32 to vector<8x64xf32>
    %349 = arith.addf %348, %347 : vector<8x64xf32>
    %350 = arith.mulf %344, %349 : vector<8x64xf32>
    %351 = arith.truncf %350 : vector<8x64xf32> to vector<8x64xbf16>
    %c1_132 = arith.constant 1 : index
    %c0_133 = arith.constant 0 : index
    %c0_134 = arith.constant 0 : index
    %352 = vector.load %arg11[%c1_132, %c0_133, %c0_134] : memref<2x64x32xbf16, #tpu.memory_space<vmem>>, vector<1x64x32xbf16>
    %353 = vector.shape_cast %352 : vector<1x64x32xbf16> to vector<64x32xbf16>
    %cst_135 = arith.constant dense<0.000000e+00> : vector<8x32xf32>
    %354 = tpu.matmul %351, %353, %cst_135 {dimension_numbers = #tpu.dot_dimension_numbers<[1], [0], [0], [1], [0, 0, 1, 1], [], []>} : vector<8x64xbf16>, vector<64x32xbf16>, vector<8x32xf32> -> vector<8x32xf32>
    %c1_136 = arith.constant 1 : index
    %c0_137 = arith.constant 0 : index
    %c0_138 = arith.constant 0 : index
    %355 = vector.load %arg12[%c1_136, %c0_137, %c0_138] : memref<2x1x32xf32, #tpu.memory_space<vmem>>, vector<1x1x32xf32>
    %356 = vector.shape_cast %355 : vector<1x1x32xf32> to vector<1x32xf32>
    %357 = vector.broadcast %356 : vector<1x32xf32> to vector<8x32xf32>
    %358 = arith.addf %354, %357 : vector<8x32xf32>
    %359 = arith.addf %358, %334 : vector<8x32xf32>
    %c1_139 = arith.constant 1 : index
    %c0_140 = arith.constant 0 : index
    %c0_141 = arith.constant 0 : index
    %360 = vector.load %arg13[%c1_139, %c0_140, %c0_141] : memref<2x2x32xf32, #tpu.memory_space<vmem>>, vector<1x2x32xf32>
    %361 = vector.shape_cast %360 : vector<1x2x32xf32> to vector<2x32xf32>
    %362 = vector.extract_strided_slice %361 {offsets = [0, 0], sizes = [1, 32], strides = [1, 1]} : vector<2x32xf32> to vector<1x32xf32>
    %363 = vector.extract_strided_slice %361 {offsets = [1, 0], sizes = [1, 32], strides = [1, 1]} : vector<2x32xf32> to vector<1x32xf32>
    %cst_142 = arith.constant dense<0.000000e+00> : vector<8xf32>
    %364 = vector.multi_reduction <add>, %359, %cst_142 [1] : vector<8x32xf32> to vector<8xf32>
    %365 = vector.shape_cast %364 : vector<8xf32> to vector<8x1xf32>
    %cst_143 = arith.constant 3.200000e+01 : f32
    %366 = vector.broadcast %cst_143 : f32 to vector<8x1xf32>
    %367 = arith.divf %365, %366 : vector<8x1xf32>
    %368 = vector.broadcast %367 : vector<8x1xf32> to vector<8x32xf32>
    %369 = arith.subf %359, %368 : vector<8x32xf32>
    %370 = arith.mulf %369, %369 : vector<8x32xf32>
    %cst_144 = arith.constant dense<0.000000e+00> : vector<8xf32>
    %371 = vector.multi_reduction <add>, %370, %cst_144 [1] : vector<8x32xf32> to vector<8xf32>
    %372 = vector.shape_cast %371 : vector<8xf32> to vector<8x1xf32>
    %cst_145 = arith.constant 3.200000e+01 : f32
    %373 = vector.broadcast %cst_145 : f32 to vector<8x1xf32>
    %374 = arith.divf %372, %373 : vector<8x1xf32>
    %cst_146 = arith.constant 9.99999974E-6 : f32
    %375 = vector.broadcast %cst_146 : f32 to vector<8x1xf32>
    %376 = arith.addf %374, %375 : vector<8x1xf32>
    %377 = math.rsqrt %376 : vector<8x1xf32>
    %378 = vector.broadcast %377 : vector<8x1xf32> to vector<8x32xf32>
    %379 = arith.mulf %369, %378 : vector<8x32xf32>
    %380 = vector.broadcast %362 : vector<1x32xf32> to vector<8x32xf32>
    %381 = arith.mulf %379, %380 : vector<8x32xf32>
    %382 = vector.broadcast %363 : vector<1x32xf32> to vector<8x32xf32>
    %383 = arith.addf %381, %382 : vector<8x32xf32>
    %384 = arith.truncf %383 : vector<8x32xf32> to vector<8x32xbf16>
    %c0_147 = arith.constant 0 : index
    %c0_148 = arith.constant 0 : index
    %385 = vector.load %arg14[%c0_147, %c0_148] : memref<32x128xbf16, #tpu.memory_space<vmem>>, vector<32x128xbf16>
    %cst_149 = arith.constant dense<0.000000e+00> : vector<8x128xf32>
    %386 = tpu.matmul %384, %385, %cst_149 {dimension_numbers = #tpu.dot_dimension_numbers<[1], [0], [0], [1], [0, 0, 1, 1], [], []>} : vector<8x32xbf16>, vector<32x128xbf16>, vector<8x128xf32> -> vector<8x128xf32>
    %c0_150 = arith.constant 0 : index
    %c0_151 = arith.constant 0 : index
    %387 = vector.load %arg15[%c0_150, %c0_151] : memref<1x128xf32, #tpu.memory_space<vmem>>, vector<1x128xf32>
    %388 = vector.broadcast %387 : vector<1x128xf32> to vector<8x128xf32>
    %389 = arith.addf %386, %388 : vector<8x128xf32>
    %c0_152 = arith.constant 0 : index
    %c0_153 = arith.constant 0 : index
    %c0_154 = arith.constant 0 : index
    %390 = vector.load %arg16[%c0_152, %c0_153, %c0_154] : memref<1x8x128xf32, #tpu.memory_space<vmem>>, vector<1x8x128xf32>
    %391 = vector.shape_cast %390 : vector<1x8x128xf32> to vector<8x128xf32>
    %392 = vector.shape_cast %389 : vector<8x128xf32> to vector<1x8x128xf32>
    tpu.vector_store %arg16[%c0_152, %c0_153, %c0_154], %392 {strides = array<i32>} : memref<1x8x128xf32, #tpu.memory_space<vmem>>, vector<1x8x128xf32>,
    return
  }
  func.func @transform_0(%arg0: i32) -> (i32, i32, i32) {
    %c0_i32 = arith.constant 0 : i32
    %c0_i32_0 = arith.constant 0 : i32
    %c0_i32_1 = arith.constant 0 : i32
    return %arg0, %c0_i32, %c0_i32_0 : i32, i32, i32
  }
  func.func @transform_1(%arg0: i32) -> (i32, i32, i32) {
    %c0_i32 = arith.constant 0 : i32
    %c0_i32_0 = arith.constant 0 : i32
    %c0_i32_1 = arith.constant 0 : i32
    return %arg0, %c0_i32, %c0_i32_0 : i32, i32, i32
  }
  func.func @transform_2(%arg0: i32) -> (i32, i32) {
    %c0_i32 = arith.constant 0 : i32
    %c0_i32_0 = arith.constant 0 : i32
    %c0_i32_1 = arith.constant 0 : i32
    return %c0_i32, %c0_i32_0 : i32, i32
  }
  func.func @transform_3(%arg0: i32) -> (i32, i32, i32) {
    %c0_i32 = arith.constant 0 : i32
    %c0_i32_0 = arith.constant 0 : i32
    %c0_i32_1 = arith.constant 0 : i32
    %c0_i32_2 = arith.constant 0 : i32
    return %c0_i32, %c0_i32_0, %c0_i32_1 : i32, i32, i32
  }
  func.func @transform_4(%arg0: i32) -> (i32, i32, i32) {
    %c0_i32 = arith.constant 0 : i32
    %c0_i32_0 = arith.constant 0 : i32
    %c0_i32_1 = arith.constant 0 : i32
    %c0_i32_2 = arith.constant 0 : i32
    return %c0_i32, %c0_i32_0, %c0_i32_1 : i32, i32, i32
  }
  func.func @transform_5(%arg0: i32) -> (i32, i32, i32) {
    %c0_i32 = arith.constant 0 : i32
    %c0_i32_0 = arith.constant 0 : i32
    %c0_i32_1 = arith.constant 0 : i32
    %c0_i32_2 = arith.constant 0 : i32
    return %c0_i32, %c0_i32_0, %c0_i32_1 : i32, i32, i32
  }
  func.func @transform_6(%arg0: i32) -> (i32, i32, i32) {
    %c0_i32 = arith.constant 0 : i32
    %c0_i32_0 = arith.constant 0 : i32
    %c0_i32_1 = arith.constant 0 : i32
    %c0_i32_2 = arith.constant 0 : i32
    return %c0_i32, %c0_i32_0, %c0_i32_1 : i32, i32, i32
  }
  func.func @transform_7(%arg0: i32) -> (i32, i32, i32) {
    %c0_i32 = arith.constant 0 : i32
    %c0_i32_0 = arith.constant 0 : i32
    %c0_i32_1 = arith.constant 0 : i32
    %c0_i32_2 = arith.constant 0 : i32
    return %c0_i32, %c0_i32_0, %c0_i32_1 : i32, i32, i32
  }
  func.func @transform_8(%arg0: i32) -> (i32, i32, i32) {
    %c0_i32 = arith.constant 0 : i32
    %c0_i32_0 = arith.constant 0 : i32
    %c0_i32_1 = arith.constant 0 : i32
    %c0_i32_2 = arith.constant 0 : i32
    return %c0_i32, %c0_i32_0, %c0_i32_1 : i32, i32, i32
  }
  func.func @transform_9(%arg0: i32) -> (i32, i32, i32) {
    %c0_i32 = arith.constant 0 : i32
    %c0_i32_0 = arith.constant 0 : i32
    %c0_i32_1 = arith.constant 0 : i32
    %c0_i32_2 = arith.constant 0 : i32
    return %c0_i32, %c0_i32_0, %c0_i32_1 : i32, i32, i32
  }
  func.func @transform_10(%arg0: i32) -> (i32, i32, i32) {
    %c0_i32 = arith.constant 0 : i32
    %c0_i32_0 = arith.constant 0 : i32
    %c0_i32_1 = arith.constant 0 : i32
    %c0_i32_2 = arith.constant 0 : i32
    return %c0_i32, %c0_i32_0, %c0_i32_1 : i32, i32, i32
  }
  func.func @transform_11(%arg0: i32) -> (i32, i32, i32) {
    %c0_i32 = arith.constant 0 : i32
    %c0_i32_0 = arith.constant 0 : i32
    %c0_i32_1 = arith.constant 0 : i32
    %c0_i32_2 = arith.constant 0 : i32
    return %c0_i32, %c0_i32_0, %c0_i32_1 : i32, i32, i32
  }
  func.func @transform_12(%arg0: i32) -> (i32, i32, i32) {
    %c0_i32 = arith.constant 0 : i32
    %c0_i32_0 = arith.constant 0 : i32
    %c0_i32_1 = arith.constant 0 : i32
    %c0_i32_2 = arith.constant 0 : i32
    return %c0_i32, %c0_i32_0, %c0_i32_1 : i32, i32, i32
  }
  func.func @transform_13(%arg0: i32) -> (i32, i32) {
    %c0_i32 = arith.constant 0 : i32
    %c0_i32_0 = arith.constant 0 : i32
    %c0_i32_1 = arith.constant 0 : i32
    return %c0_i32, %c0_i32_0 : i32, i32
  }
  func.func @transform_14(%arg0: i32) -> (i32, i32) {
    %c0_i32 = arith.constant 0 : i32
    %c0_i32_0 = arith.constant 0 : i32
    %c0_i32_1 = arith.constant 0 : i32
    return %c0_i32, %c0_i32_0 : i32, i32
  }
  func.func @transform_15(%arg0: i32) -> (i32, i32, i32) {
    %c0_i32 = arith.constant 0 : i32
    %c0_i32_0 = arith.constant 0 : i32
    %c0_i32_1 = arith.constant 0 : i32
    return %arg0, %c0_i32, %c0_i32_0 : i32, i32, i32
  }
}

</mosaic_0001>

<bundles_post_ra>
// kernel: pos_model_forward.1
= control target key start
LH: loop header
LB: loop body
LE: loop exit
PB: predicated region body
PF: predicated region fallthrough
CT: control target
= control target key end

     0   :  { %s3394_s0 = inlined_call_operand.vmem [shape: f32[2,8,32], index: 0, kind: input, shape index: {}]   ;;  %s3395_s1 = inlined_call_operand.vmem [shape: f32[2,1,8], index: 1, kind: input, shape index: {}]   ;;  %s3396_s2 = inlined_call_operand.vmem [shape: f32[2,32], index: 2, kind: input, shape index: {}]   ;;  %s3397_s3 = inlined_call_operand.vmem [shape: bf16[2,32,96], index: 3, kind: input, shape index: {}]   ;;  %s3398_s4 = inlined_call_operand.vmem [shape: f32[2,1,96], index: 4, kind: input, shape index: {}]   ;;  %s3399_s5 = inlined_call_operand.vmem [shape: bf16[2,32,32], index: 5, kind: input, shape index: {}]   ;;  %s3400_s6 = inlined_call_operand.vmem [shape: f32[2,1,32], index: 6, kind: input, shape index: {}]   ;;  %s3401_s7 = inlined_call_operand.vmem [shape: f32[2,2,32], index: 7, kind: input, shape index: {}]   ;;  %s3402_s8 = inlined_call_operand.vmem [shape: bf16[2,32,64], index: 8, kind: input, shape index: {}]   ;;  %s3403_s9 = inlined_call_operand.vmem [shape: f32[2,1,64], index: 9, kind: input, shape index: {}]   ;;  %s3404_s10 = inlined_call_operand.vmem [shape: bf16[2,64,32], index: 10, kind: input, shape index: {}]   ;;  %s3405_s11 = inlined_call_operand.vmem [shape: f32[2,1,32], index: 11, kind: input, shape index: {}]   ;;  %s3406_s12 = inlined_call_operand.vmem [shape: f32[2,2,32], index: 12, kind: input, shape index: {}]   ;;  %s3407_s13 = inlined_call_operand.vmem [shape: bf16[32,128], index: 13, kind: input, shape index: {}]   ;;  %s3408_s14 = inlined_call_operand.vmem [shape: f32[1,128], index: 14, kind: input, shape index: {}]   ;;  %s3409_s15 = inlined_call_operand.hbm [shape: f32[2,8,128], index: 15, kind: output, shape index: {}]  }
   0x1   :  { %3424 = sst [smem:[#allocation6_spill]] %s3394_s0 }
   0x2   :  { %3425 = sst [smem:[#allocation7_spill]] %s3395_s1 }
   0x3   :  { %3426 = sst [smem:[#allocation8_spill]] %s3396_s2 }
   0x4   :  { %20 = vsyncpa [#allocation3], 0 }
   0x5   :  { %22 = vsyncpa [#allocation3 + $0x1], 0  ;;  %s2927_s18 = smov 0   ;;  %s2929_s19 = smov 0  }
   0x6   :  { %s2931_s20 = smov 0   ;;  %s2933_s21 = smov 0  }
   0x7 LB: > { %s2948_s22 = sadd.s32 4294967295, %s2827_s21   ;;  %s2310_s23 = sadd.s32 4294967294, %s2827_s21   ;;  %s2827_s21 = sphi %s2933_s21, %s3451_s21   ;;  %s2823_s20 = sphi %s2931_s20, %s3450_s20   ;;  %s2819_s19 = sphi %s2929_s19, %s3449_s19   ;;  %s2815_s18 = sphi %s2927_s18, %s3448_s18  }
   0x8   : > { %s2952_s24 = sadd.s32 1, %s2827_s21   ;;  %s360_s25 = sadd.s32 1, %s2823_s20 }
   0x9   : > { %s357_s26 = ssub.s32 %s2827_s21, %s2952_s24  ;;  %p370_p0 = scmp.ne.s32.totalorder %s2823_s20, %s2819_s19 }
   0xa   : > { %p358_p1 = scmp.eq.s32.totalorder %s357_s26, 0  ;;  %p371_p2 = scmp.eq.s32.totalorder %s2948_s22, 1 }
   0xb   : > { %p376_p3 = scmp.ne.s32.totalorder %s2819_s19, %s2815_s18  ;;  %p377_p4 = scmp.eq.s32.totalorder %s2310_s23, 1 }
   0xc   : > { %s2963_s27 = scalar_select %p358_p1, %s2823_s20, %s360_s25  }
   0xd   : > { %p2965_p5 = por %p371_p2, %p370_p0  ;;  %p2969_p6 = por %p377_p4, %p376_p3 }
   0xe   : > { %3427 = sst [smem:[#allocation5_spill]] %s2963_s27  ;;  %p2313_p7 = scmp.ge.s32.totalorder %s2827_s21, 1 }
   0xf   : > { %p447_p8 = scmp.lt.s32.totalorder %s2827_s21, 3 }
  0x11   : > { %p448_p9 = pnand %p2313_p7, %p447_p8 }
  0x12   : > { %p497_p10 = scmp.lt.s32.totalorder (!%p448_p9), %s2948_s22, 1  ;;  %vm510_vm0 = vcmask (!%p448_p9), 261120   ;;  %s3430_s0 = sld [smem:[#allocation6_spill]] (!%p448_p9)  ;;  %v2697_v7 = vld [vmem:[%s3397_s3] sm:$0xff] (!%p448_p9)   ;;  %v2829_v8 = vmov (!%p448_p9), 0.0   ;;  %v2698_v9 = vld [vmem:[%s3397_s3 + $0x8] sm:$0xff] (!%p448_p9)   ;;  %v525_v12 = vlaneseq (!%p448_p9) }
  0x13   : > { %451 = sbr.rel (%p448_p9) target bundleno = 5688 (0x1638), region = 80  ;;  %2465 = vmatprep.subr.bf16.mxu0 (!%p448_p9), %v2829_v8  ;;  %2473 = vmatprep.subr.bf16.mxu1 (!%p448_p9), %v2829_v8  ;;  %vm2830_vm1 = vmmov (!%p448_p9), 0   ;;  %s3431_s2 = sld [smem:[#allocation8_spill]] (!%p448_p9)  ;;  %v2316_v25 = vld [vmem:[%s3398_s4] ss:$0 sm:$0xff] (!%p448_p9)  ;;  %vm606_vm2 = vcmask (!%p448_p9), 64512  }
  0x14   : > { %2466 = vmatpush3.bf16.msra.mxu0 (!%p448_p9), %v2697_v7  ;;  %2469 = vmatprep.mubr.msk.bf16.mxu0 (!%p448_p9), %vm2830_vm1, %v2829_v8  ;;  %v526_v14 = vshrl.u32 (!%p448_p9), %v525_v12, 7  ;;  %s3419_s17 = smov (!%p448_p9), 120   ;;  %s3423_s27 = smov (!%p448_p9), 96   ;;  %v2838_v44 = vmov (!%p448_p9), -1e+09   ;;  %vm678_vm4 = vcmask (!%p448_p9), 1043456  }
  0x15   : > { %2467 = vmatprep.subr.bf16.mxu0 (!%p448_p9), %v2829_v8  ;;  %2475 = vmatprep.mubr.msk.bf16.mxu1 (!%p448_p9), %vm2830_vm1, %v2829_v8  ;;  %s3418_s23 = smov (!%p448_p9), 72   ;;  %s3412_s26 = smov (!%p448_p9), 48   ;;  %vm1071_vm5 = vcmask (!%p448_p9), 130048   ;;  %vm1073_vm6 = vcmask (!%p448_p9), 195584   ;;  %vm1279_vm7 = vcmask (!%p448_p9), 523264  }
  0x16   : > { %v2999_v15 = vsub.s32 (!%p448_p9), 0, %v526_v14  ;;  %v3004_v17 = vsub.s32 (!%p448_p9), 1, %v526_v14  ;;  %s3432_s1 = sld [smem:[#allocation7_spill]] (!%p448_p9) }
  0x18   : > { %2468 = vmatpush3.bf16.msra.mxu0 (!%p448_p9), %v2698_v9 }
  0x19   : > { %2479 = vmatprep.subr.bf16.mxu0 (!%p448_p9), %v2829_v8  ;;  %v509_v16 = vld [vmem:[%s3431_s2] sm:$0x3] (!%p448_p9) }
  0x1a   : > { %s2977_s30 = scalar_select %p497_p10, %s2948_s22, 1  ;;  %v528_v18 = vrot.slane %v509_v16, %v2999_v15  ;;  %v533_v21 = vrot.slane %v509_v16, %v3004_v17 }
  0x1c   : > { %s2315_s16 = sshll.u32 %s2977_s30, 3 }
  0x1d   : > { %s500_s25 = scalar_lea.vmem %s3430_s0, %s2315_s16  ;;  %s3410_s16 = smov 104  }
  0x1e   : > { %v505_v0 = vld [vmem:[%s500_s25] sm:$0xff]  ;;  %s3413_s25 = smov 80  }
  0x1f   : > { %v511_v1 = vsel %vm510_vm0, %v505_v0, 0.0 }
  0x20   : > { %512 = vadd.xlane.f32.xlu0 %v511_v1 }
  0xad   : > { %v513_v2 = vpop.xlane.xlu0 %512 }
  0xae   : > { %v515_v3 = vmul.f32 0.03125, %v513_v2 }
  0xb0   : > { %v516_v4 = vsub.f32 %v505_v0, %v515_v3 }
  0xb2   : > { %v517_v5 = vmul.f32 %v516_v4, %v516_v4 }
  0xb4   : > { %v518_v6 = vsel %vm510_vm0, %v517_v5, 0.0 }
  0xb5   : > { %519 = vadd.xlane.f32.xlu0 %v518_v6 }
 0x142   : > { %v520_v10 = vpop.xlane.xlu0 %519 }
 0x143   : > { %v521_v11 = vmul.f32 0.03125, %v520_v10 }
 0x145   : > { %v522_v13 = vadd.f32 1e-05, %v521_v11 }
 0x147   : > { %2719 = vrsqrt.f32 %v522_v13 }
 0x151   : > { %v2720_v19 = vpop.eup %2719 }
 0x152   : > { %v524_v20 = vmul.f32 %v2720_v19, %v516_v4 }
 0x154   : > { %v529_v22 = vmul.f32 %v528_v18, %v524_v20 }
 0x156   : > { %v3008_v23 = vadd.f32 %v533_v21, %v529_v22 }
 0x158   : > { %v535_v24 = vpack.c.bf16 %v3008_v23, %v3008_v23 }
 0x15a   : > { %2470 = vmatmul.mubr.msk.bf16.vlgmr.msra.gmra.mrb[0].mxu0 %vm510_vm0, %v535_v24 }
 0x15b   : > { %2481 = vmatprep.mubr.msk.bf16.mxu0 %vm2830_vm1, %v2829_v8 }
 0x22d   : > { %v596_v26 = vpop.f32.mrb[0].mxu0 }
 0x22e   : > { %v597_v27 = vadd.f32 %v2316_v25, %v596_v26  ;;  %v2471_v28 = vpop.f32.mrb[1].mxu0 }
 0x22f   : > { %v599_v29 = vpop.f32.mrb[2].mxu0 }
 0x230   : > { %v3018_v30 = vpack.c.bf16 %v597_v27, %v597_v27  ;;  %v2472_v31 = vpop.f32.mrb[3].mxu0 }
 0x232   : > { %722 = vrot.lane.b32.xlu0 %v3018_v30, %s3410_s16  ;;  %604 = vrot.lane.b32.xlu1 %v3018_v30, %s3419_s17  ;;  %s3411_s16 = smov 56   ;;  %s3421_s17 = smov 16  }
 0x236   : > { %724 = vrot.lane.b32.xlu1 %v3018_v30, %s3423_s27  ;;  %s3437_s27 = smov 80  }
 0x23a   : > { %836 = vrot.lane.b32.xlu1 %v3018_v30, %s3418_s23  ;;  %s3439_s23 = smov 56  }
 0x23e   : > { %834 = vrot.lane.b32.xlu1 %v3018_v30, %s3413_s25  ;;  %s503_s25 = scalar_lea.vmem %s3432_s1, %s2977_s30  ;;  %s3417_s30 = smov 112  }
 0x23f   : > { %v506_v43 = vld [vmem:[%s503_s25] sm:$0x1]  ;;  %s3415_s25 = smov 64  }
 0x240   : > { %vm507_vm3 = vcmp.gt.f32.partialorder %v506_v43, 0.0 }
 0x241   : > { %v508_v45 = vsel %vm507_vm3, 0.0, %v2838_v44 }
 0x242   : > { %948 = vrot.lane.b32.xlu1 %v3018_v30, %s3412_s26  ;;  %v3060_v46 = vrot.slane %v508_v45, %v2999_v15  ;;  %s3414_s26 = smov 40  }
 0x246   : > { %946 = vrot.lane.b32.xlu1 %v3018_v30, %s3411_s16  ;;  %s3416_s16 = smov 88  }
 0x2a4   : > { %v605_v32 = vpop.permute.xlu1 %604  ;;  %v723_v37 = vpop.permute.xlu0 %722 }
 0x2a5   : > { %v611_v33 = vsel %vm606_vm2, %v605_v32, 0 }
 0x2a6   : > { %2474 = vmatpush3.bf16.xpose.msra.mxu1 %v611_v33 }
 0x2a7   : > { %2485 = vmatprep.subr.bf16.mxu1 %v2829_v8 }
 0x2a8   : > { %v725_v34 = vpop.permute.xlu1 %724 }
 0x2a9   : > { %v730_v35 = vsel %vm606_vm2, %v725_v34, 0 }
 0x2ac   : > { %v837_v36 = vpop.permute.xlu1 %836 }
 0x2ad   : > { %2476 = vmatmul.mubr.msk.bf16.vlgmr.msra.gmra.mrb[0].mxu1 %vm606_vm2, %v3018_v30  ;;  %v842_v39 = vsel %vm606_vm2, %v837_v36, 0 }
 0x2ae   : > { %2486 = vmatpush3.bf16.xpose.msra.mxu1 %v730_v35  ;;  %2487 = vmatprep.mubr.msk.bf16.mxu1 %vm2830_vm1, %v2829_v8 }
 0x2af   : > { %2497 = vmatprep.subr.bf16.mxu1 %v2829_v8 }
 0x2b0   : > { %v835_v38 = vpop.permute.xlu1 %834 }
 0x2b4   : > { %v949_v40 = vpop.permute.xlu1 %948 }
 0x2b5   : > { %2488 = vmatmul.mubr.msk.bf16.vlgmr.msra.gmra.mrb[4].mxu1 %vm606_vm2, %v723_v37  ;;  %v954_v41 = vsel %vm606_vm2, %v949_v40, 0 }
 0x2b6   : > { %2498 = vmatpush3.bf16.xpose.msra.mxu1 %v842_v39  ;;  %2499 = vmatprep.mubr.msk.bf16.mxu1 %vm2830_vm1, %v2829_v8 }
 0x2b7   : > { %2509 = vmatprep.subr.bf16.mxu1 %v2829_v8 }
 0x2b8   : > { %v947_v42 = vpop.permute.xlu1 %946 }
 0x2bd   : > { %2500 = vmatmul.mubr.msk.bf16.vlgmr.msra.gmra.mrb[8].mxu1 %vm606_vm2, %v835_v38 }
 0x2be   : > { %2510 = vmatpush3.bf16.xpose.msra.mxu1 %v954_v41  ;;  %2511 = vmatprep.mubr.msk.bf16.mxu1 %vm2830_vm1, %v2829_v8 }
 0x2bf   : > { %2521 = vmatprep.subr.bf16.mxu1 %v2829_v8 }
 0x2c5   : > { %2512 = vmatmul.mubr.msk.bf16.vlgmr.msra.gmra.mrb[12].mxu1 %vm606_vm2, %v947_v42 }
 0x2c6   : > { %2525 = vmatprep.mubr.msk.bf16.mxu1 %vm2830_vm1, %v2829_v8 }
 0x380   : > { %v647_v47 = vpop.f32.mrb[0].mxu1 }
 0x381   : > { %v653_v48 = vmul.f32 0.35355338, %v647_v47  ;;  %v2477_v49 = vpop.f32.mrb[1].mxu1 }
 0x382   : > { %v650_v50 = vpop.f32.mrb[2].mxu1 }
 0x383   : > { %v2478_v51 = vpop.f32.mrb[3].mxu1  ;;  %v660_v52 = vadd.f32 %v3060_v46, %v653_v48 }
 0x385   : > { %v661_v53 = vsel %vm606_vm2, %v660_v52, -inf }
 0x386   : > { %662 = vmax.xlane.f32.xlu1 %v661_v53 }
 0x388   : > { %v766_v54 = vpop.f32.mrb[4].mxu1 }
 0x389   : > { %v772_v55 = vmul.f32 0.35355338, %v766_v54  ;;  %v2489_v56 = vpop.f32.mrb[5].mxu1 }
 0x38a   : > { %v769_v57 = vpop.f32.mrb[6].mxu1 }
 0x38b   : > { %v2490_v58 = vpop.f32.mrb[7].mxu1  ;;  %v773_v59 = vadd.f32 %v772_v55, %v3060_v46 }
 0x38d   : > { %v774_v60 = vsel %vm606_vm2, %v773_v59, -inf }
 0x38e   : > { %775 = vmax.xlane.f32.xlu0 %v774_v60 }
 0x390   : > { %v878_v61 = vpop.f32.mrb[8].mxu1 }
 0x391   : > { %v884_v62 = vmul.f32 0.35355338, %v878_v61  ;;  %v2501_v63 = vpop.f32.mrb[9].mxu1 }
 0x392   : > { %v881_v0 = vpop.f32.mrb[10].mxu1 }
 0x393   : > { %v2502_v1 = vpop.f32.mrb[11].mxu1  ;;  %v885_v2 = vadd.f32 %v884_v62, %v3060_v46 }
 0x395   : > { %v886_v3 = vsel %vm606_vm2, %v885_v2, -inf }
 0x396   : > { %887 = vmax.xlane.f32.xlu1 %v886_v3 }
 0x398   : > { %v990_v4 = vpop.f32.mrb[12].mxu1 }
 0x399   : > { %v996_v5 = vmul.f32 0.35355338, %v990_v4  ;;  %v2513_v6 = vpop.f32.mrb[13].mxu1  ;;  %v2699_v4 = vld [vmem:[%s3399_s5] sm:$0xff]  }
 0x39a   : > { %v993_v7 = vpop.f32.mrb[14].mxu1  ;;  %2522 = vmatpush3.bf16.msra.mxu1 %v2699_v4 }
 0x39b   : > { %v2514_v9 = vpop.f32.mrb[15].mxu1  ;;  %v997_v10 = vadd.f32 %v996_v5, %v3060_v46  ;;  %2523 = vmatprep.subr.bf16.mxu1 %v2829_v8  ;;  %v2700_v5 = vld [vmem:[%s3399_s5 + $0x8] sm:$0xff]  }
 0x39d   : > { %v998_v11 = vsel %vm606_vm2, %v997_v10, -inf }
 0x39e   : > { %999 = vmax.xlane.f32.xlu0 %v998_v11  ;;  %2524 = vmatpush3.bf16.msra.mxu1 %v2700_v5 }
 0x39f   : > { %2537 = vmatprep.subr.bf16.mxu1 %v2829_v8 }
 0x413   : > { %v663_v12 = vpop.xlane.xlu1 %662 }
 0x414   : > { %v664_v13 = vsub.f32 %v660_v52, %v663_v12 }
 0x416   : > { %v665_v14 = vmul.f32 1.442695, %v664_v13 }
 0x418   : > { %2721 = vpow2.f32 %v665_v14 }
 0x41b   : > { %v776_v16 = vpop.xlane.xlu0 %775 }
 0x41c   : > { %v777_v18 = vsub.f32 %v773_v59, %v776_v16 }
 0x41e   : > { %v778_v19 = vmul.f32 1.442695, %v777_v18 }
 0x420   : > { %2723 = vpow2.f32 %v778_v19 }
 0x422   : > { %v2722_v20 = vpop.eup %2721 }
 0x423   : > { %v667_v21 = vsel %vm606_vm2, %v2722_v20, 0.0  ;;  %v888_v31 = vpop.xlane.xlu1 %887 }
 0x424   : > { %668 = vadd.xlane.f32.xlu1 %v667_v21  ;;  %v889_v32 = vsub.f32 %v885_v2, %v888_v31 }
 0x426   : > { %v890_v33 = vmul.f32 1.442695, %v889_v32 }
 0x42a   : > { %v2724_v22 = vpop.eup %2723 }
 0x42b   : > { %v1000_v24 = vpop.xlane.xlu0 %999  ;;  %v780_v25 = vsel %vm606_vm2, %v2724_v22, 0.0 }
 0x42c   : > { %v1001_v26 = vsub.f32 %v997_v10, %v1000_v24  ;;  %781 = vadd.xlane.f32.xlu0 %v780_v25  ;;  %v2328_v25 = vld [vmem:[%s3400_s6] ss:$0 sm:$0xff] }
 0x42e   : > { %v1002_v27 = vmul.f32 1.442695, %v1001_v26 }
 0x430   : > { %2725 = vpow2.f32 %v1002_v27 }
 0x431   : > { %2727 = vpow2.f32 %v890_v33 }
 0x435   : > { %673 = vrot.lane.b32.xlu1 %v3018_v30, %s3417_s30  ;;  %s3433_s30 = smov 96  }
 0x43a   : > { %v2726_v28 = vpop.eup %2725 }
 0x43b   : > { %v1004_v29 = vsel %vm606_vm2, %v2726_v28, 0.0  ;;  %v2728_v34 = vpop.eup %2727 }
 0x43c   : > { %1005 = vadd.xlane.f32.xlu0 %v1004_v29  ;;  %v892_v35 = vsel %vm606_vm2, %v2728_v34, 0.0 }
 0x452   : > { %786 = vrot.lane.b32.xlu0 %v3018_v30, %s3416_s16  ;;  %s3420_s16 = smov 24  }
 0x459   : > { %893 = vadd.xlane.f32.xlu1 %v892_v35 }
 0x46a   : > { %898 = vrot.lane.b32.xlu1 %v3018_v30, %s3415_s25  ;;  %s3435_s25 = smov 104  }
 0x46e   : > { %1010 = vrot.lane.b32.xlu1 %v3018_v30, %s3414_s26  ;;  %s3422_s26 = smov 8  }
 0x4b1   : > { %v669_v36 = vpop.xlane.xlu1 %668 }
 0x4b2   : > { %2729 = vrcp.f32 %v669_v36 }
 0x4b5   : > { %v674_v37 = vpop.permute.xlu1 %673 }
 0x4b6   : > { %v680_v38 = vsel %vm678_vm4, %v674_v37, 0 }
 0x4b7   : > { %2480 = vmatpush3.bf16.msra.mxu0 %v680_v38 }
 0x4b8   : > { %2491 = vmatprep.subr.bf16.mxu0 %v2829_v8 }
 0x4b9   : > { %v782_v40 = vpop.xlane.xlu0 %781 }
 0x4ba   : > { %2731 = vrcp.f32 %v782_v40  ;;  %v2702_v40 = vld [vmem:[%s3402_s8 + $0x8] sm:$0xff]  }
 0x4bc   : > { %v2730_v39 = vpop.eup %2729 }
 0x4bd   : > { %v671_v41 = vmul.f32 %v2730_v39, %v2722_v20  ;;  %v2701_v39 = vld [vmem:[%s3402_s8] sm:$0xff]  }
 0x4bf   : > { %v672_v42 = vpack.c.bf16 %v671_v41, %v671_v41 }
 0x4c1   : > { %2482 = vmatmul.mubr.msk.bf16.vlgmr.msra.gmra.mrb[4].mxu0 %vm606_vm2, %v672_v42 }
 0x4c2   : > { %2493 = vmatprep.mubr.msk.bf16.mxu0 %vm2830_vm1, %v2829_v8 }
 0x4c4   : > { %v2732_v30 = vpop.eup %2731 }
 0x4c5   : > { %v784_v44 = vmul.f32 %v2732_v30, %v2724_v22  ;;  %v1143_v30 = vld [vmem:[%s3401_s7] sm:$0x3] }
 0x4c7   : > { %v785_v48 = vpack.c.bf16 %v784_v44, %v784_v44 }
 0x4c9   : > { %v1006_v43 = vpop.xlane.xlu0 %1005 }
 0x4cd   : > { %v787_v45 = vpop.permute.xlu0 %786 }
 0x4ce   : > { %v792_v47 = vsel %vm678_vm4, %v787_v45, 0 }
 0x4cf   : > { %2492 = vmatpush3.bf16.msra.mxu0 %v792_v47  ;;  %v1165_v47 = vrot.slane %v1143_v30, %v3004_v17 }
 0x4d0   : > { %2503 = vmatprep.subr.bf16.mxu0 %v2829_v8 }
 0x4d2   : > { %2494 = vmatmul.mubr.msk.bf16.vlgmr.msra.gmra.mrb[8].mxu0 %vm606_vm2, %v785_v48 }
 0x4d3   : > { %2505 = vmatprep.mubr.msk.bf16.mxu0 %vm2830_vm1, %v2829_v8 }
 0x4e6   : > { %v894_v49 = vpop.xlane.xlu1 %893 }
 0x4e7   : > { %2733 = vrcp.f32 %v894_v49 }
 0x4e8   : > { %2735 = vrcp.f32 %v1006_v43  ;;  %v1160_v43 = vrot.slane %v1143_v30, %v2999_v15 }
 0x4ea   : > { %v899_v50 = vpop.permute.xlu1 %898 }
 0x4eb   : > { %v904_v51 = vsel %vm678_vm4, %v899_v50, 0 }
 0x4ec   : > { %2504 = vmatpush3.bf16.msra.mxu0 %v904_v51  ;;  %v2703_v51 = vld [vmem:[%s3404_s10] sm:$0xff]  }
 0x4ed   : > { %2515 = vmatprep.subr.bf16.mxu0 %v2829_v8 }
 0x4ee   : > { %v1011_v54 = vpop.permute.xlu1 %1010 }
 0x4ef   : > { %v1016_v57 = vsel %vm678_vm4, %v1011_v54, 0  ;;  %v2706_v54 = vld [vmem:[%s3404_s10 + $0x18] sm:$0xff]  }
 0x4f1   : > { %v2734_v52 = vpop.eup %2733 }
 0x4f2   : > { %v896_v53 = vmul.f32 %v2734_v52, %v2728_v34  ;;  %v2736_v56 = vpop.eup %2735  ;;  %v2704_v52 = vld [vmem:[%s3404_s10 + $0x8] sm:$0xff]  }
 0x4f3   : > { %v1008_v58 = vmul.f32 %v2736_v56, %v2726_v28 }
 0x4f4   : > { %v897_v55 = vpack.c.bf16 %v896_v53, %v896_v53  ;;  %v2705_v53 = vld [vmem:[%s3404_s10 + $0x10] sm:$0xff]  }
 0x4f5   : > { %v1009_v59 = vpack.c.bf16 %v1008_v58, %v1008_v58 }
 0x4f6   : > { %2506 = vmatmul.mubr.msk.bf16.vlgmr.msra.gmra.mrb[12].mxu0 %vm606_vm2, %v897_v55  ;;  %v2332_v55 = vld [vmem:[%s3403_s9] ss:$0 sm:$0xff] }
 0x4f7   : > { %2516 = vmatpush3.bf16.msra.mxu0 %v1016_v57  ;;  %2517 = vmatprep.mubr.msk.bf16.mxu0 %vm2830_vm1, %v2829_v8 }
 0x4f8   : > { %2529 = vmatprep.subr.bf16.mxu0 %v2829_v8 }
 0x4fe   : > { %2518 = vmatmul.mubr.msk.bf16.vlgmr.msra.gmra.mrb[16].mxu0 %vm606_vm2, %v1009_v59 }
 0x4ff   : > { %2533 = vmatprep.mubr.msk.bf16.mxu0 %vm2830_vm1, %v2829_v8  ;;  %2530 = vmatpush3.bf16.msra.mxu0 %v2701_v39 }
 0x500   : > { %2531 = vmatprep.subr.bf16.mxu0 %v2829_v8 }
 0x503   : > { %2532 = vmatpush3.bf16.msra.mxu0 %v2702_v40 }
 0x504   : > { %2549 = vmatprep.subr.bf16.mxu0 %v2829_v8 }
 0x594   : > { %v716_v60 = vpop.f32.mrb[4].mxu0 }
 0x595   : > { %v2483_v61 = vpop.f32.mrb[5].mxu0 }
 0x596   : > { %v719_v62 = vpop.f32.mrb[6].mxu0 }
 0x597   : > { %v2484_v63 = vpop.f32.mrb[7].mxu0 }
 0x5a5   : > { %v828_v0 = vpop.f32.mrb[8].mxu0 }
 0x5a6   : > { %1059 = vrot.lane.b32.xlu0 %v828_v0, %s3422_s26  ;;  %v2495_v1 = vpop.f32.mrb[9].mxu0  ;;  %s3438_s26 = smov 48  }
 0x5a7   : > { %v831_v2 = vpop.f32.mrb[10].mxu0 }
 0x5a8   : > { %v2496_v3 = vpop.f32.mrb[11].mxu0 }
 0x5a9   : > { %v2336_v3 = vld [vmem:[%s3405_s11] ss:$0 sm:$0xff] }
 0x5c9   : > { %v940_v6 = vpop.f32.mrb[12].mxu0 }
 0x5ca   : > { %1063 = vrot.lane.b32.xlu1 %v940_v6, %s3421_s17  ;;  %v2507_v7 = vpop.f32.mrb[13].mxu0  ;;  %s3436_s17 = smov 72  }
 0x5cb   : > { %v943_v9 = vpop.f32.mrb[14].mxu0 }
 0x5cc   : > { %v2508_v10 = vpop.f32.mrb[15].mxu0 }
 0x5d1   : > { %v1052_v11 = vpop.f32.mrb[16].mxu0 }
 0x5d2   : > { %1067 = vrot.lane.b32.xlu0 %v1052_v11, %s3420_s16  ;;  %v2519_v12 = vpop.f32.mrb[17].mxu0  ;;  %s3434_s16 = smov 120  }
 0x5d3   : > { %v1055_v13 = vpop.f32.mrb[18].mxu0 }
 0x5d4   : > { %v2520_v14 = vpop.f32.mrb[19].mxu0 }
 0x618   : > { %v1060_v16 = vpop.permute.xlu0 %1059 }
 0x619   : > { %v1070_v19 = vsel %vm606_vm2, %v716_v60, %v1060_v16 }
 0x63c   : > { %v1064_v18 = vpop.permute.xlu1 %1063 }
 0x63d   : > { %v1072_v20 = vsel %vm1071_vm5, %v1070_v19, %v1064_v18  ;;  %v2707_v19 = vld [vmem:[%s3397_s3 + $0x10] sm:$0xff]  }
 0x644   : > { %v1068_v21 = vpop.permute.xlu0 %1067 }
 0x645   : > { %v1074_v22 = vsel %vm1073_vm6, %v1072_v20, %v1068_v21  ;;  %v2708_v20 = vld [vmem:[%s3397_s3 + $0x18] sm:$0xff]  }
 0x646   : > { %v1075_v24 = vpack.c.bf16 %v1074_v22, %v1074_v22 }
 0x648   : > { %2526 = vmatmul.mubr.msk.bf16.vlgmr.msra.gmra.mrb[16].mxu1 %vm510_vm0, %v1075_v24 }
 0x649   : > { %2545 = vmatprep.mubr.msk.bf16.mxu1 %vm2830_vm1, %v2829_v8  ;;  %2538 = vmatpush3.bf16.msra.mxu1 %v2703_v51 }
 0x64a   : > { %2539 = vmatprep.subr.bf16.mxu1 %v2829_v8 }
 0x64d   : > { %2540 = vmatpush3.bf16.msra.mxu1 %v2704_v52 }
 0x64e   : > { %2541 = vmatprep.subr.bf16.mxu1 %v2829_v8 }
 0x651   : > { %2542 = vmatpush3.bf16.msra.mxu1 %v2705_v53 }
 0x652   : > { %2543 = vmatprep.subr.bf16.mxu1 %v2829_v8 }
 0x655   : > { %2544 = vmatpush3.bf16.msra.mxu1 %v2706_v54 }
 0x656   : > { %2563 = vmatprep.subr.bf16.mxu1 %v2829_v8 }
 0x71b   : > { %v1136_v26 = vpop.f32.mrb[16].mxu1 }
 0x71c   : > { %v1137_v27 = vadd.f32 %v2328_v25, %v1136_v26  ;;  %v2527_v28 = vpop.f32.mrb[17].mxu1  ;;  %v1324_v25 = vld [vmem:[%s3406_s12] sm:$0x3] }
 0x71d   : > { %v1139_v29 = vpop.f32.mrb[18].mxu1  ;;  %v1341_v26 = vrot.slane %v1324_v25, %v2999_v15 }
 0x71e   : > { %v2528_v31 = vpop.f32.mrb[19].mxu1  ;;  %v1142_v32 = vadd.f32 %v1137_v27, %v3008_v23  ;;  %v1346_v29 = vrot.slane %v1324_v25, %v3004_v17 }
 0x720   : > { %v1144_v33 = vsel %vm510_vm0, %v1142_v32, 0.0 }
 0x721   : > { %1145 = vadd.xlane.f32.xlu1 %v1144_v33 }
 0x7ae   : > { %v1146_v34 = vpop.xlane.xlu1 %1145 }
 0x7af   : > { %v1147_v35 = vmul.f32 0.03125, %v1146_v34  ;;  %v2347_v34 = vld [vmem:[%s3398_s4 + $0x1] ss:$0 sm:$0xff] }
 0x7b1   : > { %v1148_v36 = vsub.f32 %v1142_v32, %v1147_v35 }
 0x7b3   : > { %v1149_v37 = vmul.f32 %v1148_v36, %v1148_v36 }
 0x7b5   : > { %v1150_v38 = vsel %vm510_vm0, %v1149_v37, 0.0 }
 0x7b6   : > { %1151 = vadd.xlane.f32.xlu0 %v1150_v38 }
 0x843   : > { %v1152_v23 = vpop.xlane.xlu0 %1151 }
 0x844   : > { %v1153_v41 = vmul.f32 0.03125, %v1152_v23 }
 0x846   : > { %v1154_v42 = vadd.f32 1e-05, %v1153_v41 }
 0x848   : > { %2737 = vrsqrt.f32 %v1154_v42 }
 0x852   : > { %v2738_v44 = vpop.eup %2737 }
 0x853   : > { %v1156_v45 = vmul.f32 %v2738_v44, %v1148_v36 }
 0x855   : > { %v1161_v48 = vmul.f32 %v1160_v43, %v1156_v45 }
 0x857   : > { %v1166_v49 = vadd.f32 %v1165_v47, %v1161_v48 }
 0x859   : > { %v1167_v50 = vpack.c.bf16 %v1166_v49, %v1166_v49 }
 0x85b   : > { %2534 = vmatmul.mubr.msk.bf16.vlgmr.msra.gmra.mrb[20].mxu0 %vm510_vm0, %v1167_v50 }
 0x85c   : > { %2553 = vmatprep.mubr.msk.bf16.mxu0 %vm2830_vm1, %v2829_v8  ;;  %2550 = vmatpush3.bf16.msra.mxu0 %v2707_v19 }
 0x85d   : > { %2551 = vmatprep.subr.bf16.mxu0 %v2829_v8 }
 0x860   : > { %2552 = vmatpush3.bf16.msra.mxu0 %v2708_v20 }
 0x861   : > { %2557 = vmatprep.subr.bf16.mxu0 %v2829_v8 }
 0x92e   : > { %v1228_v56 = vpop.f32.mrb[20].mxu0 }
 0x92f   : > { %v1229_v57 = vadd.f32 %v2332_v55, %v1228_v56  ;;  %v2535_v58 = vpop.f32.mrb[21].mxu0 }
 0x930   : > { %v1231_v59 = vpop.f32.mrb[22].mxu0 }
 0x931   : > { %v1235_v60 = vmul.f32 0.70710677, %v1229_v57  ;;  %v2536_v61 = vpop.f32.mrb[23].mxu0  ;;  %v1234_v63 = vmul.f32 0.5, %v1229_v57 }
 0x933   : > { %2739 = verf.f32 %v1235_v60 }
 0x93d   : > { %v2740_v62 = vpop.eup %2739 }
 0x93e   : > { %v1237_v0 = vadd.f32 1.0, %v2740_v62 }
 0x940   : > { %v1238_v1 = vmul.f32 %v1237_v0, %v1234_v63 }
 0x942   : > { %v1239_v2 = vpack.c.bf16 %v1238_v1, %v1238_v1 }
 0x944   : > { %2546 = vmatmul.mubr.msk.bf16.vlgmr.msra.gmra.mrb[20].mxu1 %vm1279_vm7, %v1239_v2 }
 0x945   : > { %2565 = vmatprep.mubr.msk.bf16.mxu1 %vm2830_vm1, %v2829_v8 }
 0xa17   : > { %v1317_v4 = vpop.f32.mrb[20].mxu1 }
 0xa18   : > { %v1318_v5 = vadd.f32 %v2336_v3, %v1317_v4  ;;  %v2547_v6 = vpop.f32.mrb[21].mxu1 }
 0xa19   : > { %v1320_v7 = vpop.f32.mrb[22].mxu1 }
 0xa1a   : > { %v2548_v9 = vpop.f32.mrb[23].mxu1  ;;  %v1323_v10 = vadd.f32 %v1318_v5, %v1166_v49 }
 0xa1c   : > { %v1325_v11 = vsel %vm510_vm0, %v1323_v10, 0.0 }
 0xa1d   : > { %1326 = vadd.xlane.f32.xlu0 %v1325_v11 }
 0xaaa   : > { %v1327_v12 = vpop.xlane.xlu0 %1326 }
 0xaab   : > { %v1328_v13 = vmul.f32 0.03125, %v1327_v12 }
 0xaad   : > { %v1329_v14 = vsub.f32 %v1323_v10, %v1328_v13 }
 0xaaf   : > { %v1330_v16 = vmul.f32 %v1329_v14, %v1329_v14 }
 0xab1   : > { %v1331_v18 = vsel %vm510_vm0, %v1330_v16, 0.0 }
 0xab2   : > { %1332 = vadd.xlane.f32.xlu1 %v1331_v18 }
 0xb3f   : > { %v1333_v21 = vpop.xlane.xlu1 %1332 }
 0xb40   : > { %v1334_v22 = vmul.f32 0.03125, %v1333_v21 }
 0xb42   : > { %v1335_v24 = vadd.f32 1e-05, %v1334_v22 }
 0xb44   : > { %2741 = vrsqrt.f32 %v1335_v24 }
 0xb4e   : > { %v2742_v27 = vpop.eup %2741 }
 0xb4f   : > { %v1337_v28 = vmul.f32 %v2742_v27, %v1329_v14 }
 0xb51   : > { %v1342_v31 = vmul.f32 %v1341_v26, %v1337_v28 }
 0xb53   : > { %v3181_v32 = vadd.f32 %v1346_v29, %v1342_v31 }
 0xb55   : > { %v1348_v33 = vpack.c.bf16 %v3181_v32, %v3181_v32 }
 0xb57   : > { %2554 = vmatmul.mubr.msk.bf16.vlgmr.msra.gmra.mrb[24].mxu0 %vm510_vm0, %v1348_v33 }
 0xb58   : > { %2559 = vmatprep.mubr.msk.bf16.mxu0 %vm2830_vm1, %v2829_v8 }
 0xc2a   : > { %v1411_v35 = vpop.f32.mrb[24].mxu0 }
 0xc2b   : > { %v1412_v36 = vadd.f32 %v2347_v34, %v1411_v35  ;;  %v2555_v37 = vpop.f32.mrb[25].mxu0 }
 0xc2c   : > { %v1414_v38 = vpop.f32.mrb[26].mxu0 }
 0xc2d   : > { %v3191_v39 = vpack.c.bf16 %v1412_v36, %v1412_v36  ;;  %v2556_v40 = vpop.f32.mrb[27].mxu0 }
 0xc2f   : > { %1531 = vrot.lane.b32.xlu1 %v3191_v39, %s3433_s30  ;;  %1419 = vrot.lane.b32.xlu0 %v3191_v39, %s3434_s16  ;;  %s3440_s30 = smov 112   ;;  %s3441_s16 = smov 88  }
 0xc33   : > { %1529 = vrot.lane.b32.xlu1 %v3191_v39, %s3435_s25  ;;  %1643 = vrot.lane.b32.xlu0 %v3191_v39, %s3436_s17  ;;  %s3442_s25 = smov 64   ;;  %s3443_s17 = smov 40  }
 0xc37   : > { %1641 = vrot.lane.b32.xlu1 %v3191_v39, %s3437_s27  ;;  %1755 = vrot.lane.b32.xlu0 %v3191_v39, %s3438_s26  ;;  %s3444_s27 = smov 8  }
 0xc3b   : > { %1753 = vrot.lane.b32.xlu1 %v3191_v39, %s3439_s23 }
 0xca1   : > { %v1420_v23 = vpop.permute.xlu0 %1419  ;;  %v1532_v42 = vpop.permute.xlu1 %1531 }
 0xca2   : > { %v1425_v41 = vsel %vm606_vm2, %v1420_v23, 0  ;;  %v1537_v30 = vsel %vm606_vm2, %v1532_v42, 0 }
 0xca3   : > { %2558 = vmatpush3.bf16.xpose.msra.mxu0 %v1425_v41 }
 0xca4   : > { %2569 = vmatprep.subr.bf16.mxu0 %v2829_v8 }
 0xca5   : > { %v1644_v43 = vpop.permute.xlu0 %1643  ;;  %v1530_v44 = vpop.permute.xlu1 %1529 }
 0xca6   : > { %v1649_v45 = vsel %vm606_vm2, %v1644_v43, 0 }
 0xca9   : > { %v1756_v47 = vpop.permute.xlu0 %1755  ;;  %v1642_v48 = vpop.permute.xlu1 %1641 }
 0xcaa   : > { %2560 = vmatmul.mubr.msk.bf16.vlgmr.msra.gmra.mrb[28].mxu0 %vm606_vm2, %v3191_v39  ;;  %v1761_v49 = vsel %vm606_vm2, %v1756_v47, 0 }
 0xcab   : > { %2570 = vmatpush3.bf16.xpose.msra.mxu0 %v1537_v30  ;;  %2571 = vmatprep.mubr.msk.bf16.mxu0 %vm2830_vm1, %v2829_v8 }
 0xcac   : > { %2581 = vmatprep.subr.bf16.mxu0 %v2829_v8 }
 0xcad   : > { %v1754_v50 = vpop.permute.xlu1 %1753 }
 0xcb2   : > { %2572 = vmatmul.mubr.msk.bf16.vlgmr.msra.gmra.mrb[32].mxu0 %vm606_vm2, %v1530_v44 }
 0xcb3   : > { %2582 = vmatpush3.bf16.xpose.msra.mxu0 %v1649_v45  ;;  %2583 = vmatprep.mubr.msk.bf16.mxu0 %vm2830_vm1, %v2829_v8 }
 0xcb4   : > { %2593 = vmatprep.subr.bf16.mxu0 %v2829_v8 }
 0xcba   : > { %2584 = vmatmul.mubr.msk.bf16.vlgmr.msra.gmra.mrb[36].mxu0 %vm606_vm2, %v1642_v48 }
 0xcbb   : > { %2594 = vmatpush3.bf16.xpose.msra.mxu0 %v1761_v49  ;;  %2595 = vmatprep.mubr.msk.bf16.mxu0 %vm2830_vm1, %v2829_v8 }
 0xcbc   : > { %2605 = vmatprep.subr.bf16.mxu0 %v2829_v8 }
 0xcc2   : > { %2596 = vmatmul.mubr.msk.bf16.vlgmr.msra.gmra.mrb[40].mxu0 %vm606_vm2, %v1754_v50 }
 0xcc3   : > { %2609 = vmatprep.mubr.msk.bf16.mxu0 %vm2830_vm1, %v2829_v8 }
 0xd7d   : > { %v1461_v51 = vpop.f32.mrb[28].mxu0 }
 0xd7e   : > { %v1467_v52 = vmul.f32 0.35355338, %v1461_v51  ;;  %v2561_v53 = vpop.f32.mrb[29].mxu0 }
 0xd7f   : > { %v1464_v54 = vpop.f32.mrb[30].mxu0 }
 0xd80   : > { %v2562_v55 = vpop.f32.mrb[31].mxu0  ;;  %v1468_v56 = vadd.f32 %v1467_v52, %v3060_v46 }
 0xd82   : > { %v1469_v57 = vsel %vm606_vm2, %v1468_v56, -inf }
 0xd83   : > { %1470 = vmax.xlane.f32.xlu0 %v1469_v57 }
 0xd85   : > { %v1573_v58 = vpop.f32.mrb[32].mxu0 }
 0xd86   : > { %v1579_v59 = vmul.f32 0.35355338, %v1573_v58  ;;  %v2573_v60 = vpop.f32.mrb[33].mxu0 }
 0xd87   : > { %v1576_v61 = vpop.f32.mrb[34].mxu0 }
 0xd88   : > { %v2574_v62 = vpop.f32.mrb[35].mxu0  ;;  %v1580_v63 = vadd.f32 %v1579_v59, %v3060_v46 }
 0xd8a   : > { %v1581_v0 = vsel %vm606_vm2, %v1580_v63, -inf }
 0xd8b   : > { %1582 = vmax.xlane.f32.xlu1 %v1581_v0 }
 0xd8d   : > { %v1685_v1 = vpop.f32.mrb[36].mxu0 }
 0xd8e   : > { %v1691_v2 = vmul.f32 0.35355338, %v1685_v1  ;;  %v2585_v3 = vpop.f32.mrb[37].mxu0 }
 0xd8f   : > { %v1688_v4 = vpop.f32.mrb[38].mxu0 }
 0xd90   : > { %v2586_v5 = vpop.f32.mrb[39].mxu0  ;;  %v1692_v6 = vadd.f32 %v1691_v2, %v3060_v46 }
 0xd92   : > { %v1693_v7 = vsel %vm606_vm2, %v1692_v6, -inf }
 0xd93   : > { %1694 = vmax.xlane.f32.xlu0 %v1693_v7  ;;  %v2709_v7 = vld [vmem:[%s3399_s5 + $0x10] sm:$0xff]  }
 0xd94   : > { %2606 = vmatpush3.bf16.msra.mxu0 %v2709_v7 }
 0xd95   : > { %v1797_v9 = vpop.f32.mrb[40].mxu0  ;;  %2607 = vmatprep.subr.bf16.mxu0 %v2829_v8 }
 0xd96   : > { %v1803_v10 = vmul.f32 0.35355338, %v1797_v9  ;;  %v2597_v11 = vpop.f32.mrb[41].mxu0  ;;  %v2710_v9 = vld [vmem:[%s3399_s5 + $0x18] sm:$0xff]  }
 0xd97   : > { %v1800_v12 = vpop.f32.mrb[42].mxu0 }
 0xd98   : > { %v2598_v13 = vpop.f32.mrb[43].mxu0  ;;  %v1804_v14 = vadd.f32 %v1803_v10, %v3060_v46  ;;  %2608 = vmatpush3.bf16.msra.mxu0 %v2710_v9 }
 0xd99   : > { %2621 = vmatprep.subr.bf16.mxu0 %v2829_v8 }
 0xd9a   : > { %v1805_v16 = vsel %vm606_vm2, %v1804_v14, -inf }
 0xd9b   : > { %1806 = vmax.xlane.f32.xlu0 %v1805_v16 }
 0xe10   : > { %v1471_v18 = vpop.xlane.xlu0 %1470 }
 0xe11   : > { %v1472_v19 = vsub.f32 %v1468_v56, %v1471_v18 }
 0xe13   : > { %v1473_v20 = vmul.f32 1.442695, %v1472_v19 }
 0xe15   : > { %2743 = vpow2.f32 %v1473_v20 }
 0xe18   : > { %v1583_v21 = vpop.xlane.xlu1 %1582 }
 0xe19   : > { %v1584_v22 = vsub.f32 %v1580_v63, %v1583_v21 }
 0xe1b   : > { %v1585_v24 = vmul.f32 1.442695, %v1584_v22 }
 0xe1d   : > { %2745 = vpow2.f32 %v1585_v24 }
 0xe1f   : > { %v2744_v25 = vpop.eup %2743 }
 0xe20   : > { %v1475_v26 = vsel %vm606_vm2, %v2744_v25, 0.0  ;;  %v1695_v27 = vpop.xlane.xlu0 %1694 }
 0xe21   : > { %1476 = vadd.xlane.f32.xlu1 %v1475_v26  ;;  %v1696_v36 = vsub.f32 %v1692_v6, %v1695_v27 }
 0xe23   : > { %v1697_v37 = vmul.f32 1.442695, %v1696_v36 }
 0xe27   : > { %v2746_v28 = vpop.eup %2745 }
 0xe28   : > { %v1807_v29 = vpop.xlane.xlu0 %1806  ;;  %v1587_v46 = vsel %vm606_vm2, %v2746_v28, 0.0 }
 0xe29   : > { %v1808_v31 = vsub.f32 %v1804_v14, %v1807_v29  ;;  %1588 = vadd.xlane.f32.xlu0 %v1587_v46 }
 0xe2b   : > { %v1809_v33 = vmul.f32 1.442695, %v1808_v31 }
 0xe2d   : > { %2747 = vpow2.f32 %v1809_v33 }
 0xe2e   : > { %2749 = vpow2.f32 %v1697_v37 }
 0xe32   : > { %1481 = vrot.lane.b32.xlu1 %v3191_v39, %s3440_s30  ;;  %s494_s30 = sand.u32 1, %s2819_s19  }
 0xe33   : > { %s2229_s0 = scalar_lea.sflag [#allocation3], %s494_s30 }
 0xe37   : > { %v2748_v34 = vpop.eup %2747 }
 0xe38   : > { %v1811_v35 = vsel %vm606_vm2, %v2748_v34, 0.0  ;;  %v2750_v38 = vpop.eup %2749 }
 0xe39   : > { %1812 = vadd.xlane.f32.xlu0 %v1811_v35  ;;  %v1699_v40 = vsel %vm606_vm2, %v2750_v38, 0.0 }
 0xe4f   : > { %1593 = vrot.lane.b32.xlu0 %v3191_v39, %s3441_s16  ;;  %s2314_s16 = sshll.u32 %s494_s30, 3 }
 0xe56   : > { %1700 = vadd.xlane.f32.xlu1 %v1699_v40 }
 0xe67   : > { %1705 = vrot.lane.b32.xlu1 %v3191_v39, %s3442_s25  ;;  %s3445_s25 = smov 16  }
 0xe6b   : > { %1817 = vrot.lane.b32.xlu1 %v3191_v39, %s3443_s17  ;;  %s3446_s17 = smov 24  }
 0xeae   : > { %v1477_v23 = vpop.xlane.xlu1 %1476 }
 0xeaf   : > { %2751 = vrcp.f32 %v1477_v23 }
 0xeb2   : > { %v1482_v41 = vpop.permute.xlu1 %1481 }
 0xeb3   : > { %v1487_v42 = vsel %vm678_vm4, %v1482_v41, 0 }
 0xeb4   : > { %2564 = vmatpush3.bf16.msra.mxu1 %v1487_v42  ;;  %v2711_v42 = vld [vmem:[%s3402_s8 + $0x10] sm:$0xff]  }
 0xeb5   : > { %2575 = vmatprep.subr.bf16.mxu1 %v2829_v8 }
 0xeb6   : > { %v1589_v43 = vpop.xlane.xlu0 %1588 }
 0xeb7   : > { %2753 = vrcp.f32 %v1589_v43 }
 0xeb9   : > { %v2752_v30 = vpop.eup %2751 }
 0xeba   : > { %v1479_v44 = vmul.f32 %v2752_v30, %v2744_v25  ;;  %v2712_v30 = vld [vmem:[%s3402_s8 + $0x18] sm:$0xff]  }
 0xebc   : > { %v1480_v45 = vpack.c.bf16 %v1479_v44, %v1479_v44 }
 0xebe   : > { %2566 = vmatmul.mubr.msk.bf16.vlgmr.msra.gmra.mrb[24].mxu1 %vm606_vm2, %v1480_v45  ;;  %v2368_v45 = vld [vmem:[%s3401_s7 + $0x2] sm:$0x3] }
 0xebf   : > { %2577 = vmatprep.mubr.msk.bf16.mxu1 %vm2830_vm1, %v2829_v8 }
 0xec1   : > { %v2754_v47 = vpop.eup %2753 }
 0xec2   : > { %v1591_v48 = vmul.f32 %v2754_v47, %v2746_v28  ;;  %v2364_v28 = vld [vmem:[%s3400_s6 + $0x1] ss:$0 sm:$0xff]  ;;  %v1968_v47 = vrot.slane %v2368_v45, %v2999_v15 }
 0xec4   : > { %v1592_v51 = vpack.c.bf16 %v1591_v48, %v1591_v48 }
 0xec6   : > { %v1813_v39 = vpop.xlane.xlu0 %1812 }
 0xeca   : > { %v1594_v49 = vpop.permute.xlu0 %1593 }
 0xecb   : > { %v1599_v50 = vsel %vm678_vm4, %v1594_v49, 0  ;;  %v1973_v49 = vrot.slane %v2368_v45, %v3004_v17 }
 0xecc   : > { %2576 = vmatpush3.bf16.msra.mxu1 %v1599_v50 }
 0xecd   : > { %2587 = vmatprep.subr.bf16.mxu1 %v2829_v8 }
 0xecf   : > { %2578 = vmatmul.mubr.msk.bf16.vlgmr.msra.gmra.mrb[28].mxu1 %vm606_vm2, %v1592_v51 }
 0xed0   : > { %2589 = vmatprep.mubr.msk.bf16.mxu1 %vm2830_vm1, %v2829_v8 }
 0xee3   : > { %v1701_v52 = vpop.xlane.xlu1 %1700 }
 0xee4   : > { %2755 = vrcp.f32 %v1701_v52 }
 0xee5   : > { %2757 = vrcp.f32 %v1813_v39 }
 0xee7   : > { %v1706_v53 = vpop.permute.xlu1 %1705 }
 0xee8   : > { %v1711_v54 = vsel %vm678_vm4, %v1706_v53, 0  ;;  %v2713_v53 = vld [vmem:[%s3404_s10 + $0x20] sm:$0xff]  }
 0xee9   : > { %2588 = vmatpush3.bf16.msra.mxu1 %v1711_v54  ;;  %v2714_v54 = vld [vmem:[%s3404_s10 + $0x28] sm:$0xff]  }
 0xeea   : > { %2599 = vmatprep.subr.bf16.mxu1 %v2829_v8 }
 0xeeb   : > { %v1818_v57 = vpop.permute.xlu1 %1817 }
 0xeec   : > { %v1823_v60 = vsel %vm678_vm4, %v1818_v57, 0  ;;  %v2374_v57 = vld [vmem:[%s3403_s9 + $0x1] ss:$0 sm:$0xff] }
 0xeee   : > { %v2756_v55 = vpop.eup %2755 }
 0xeef   : > { %v1703_v56 = vmul.f32 %v2756_v55, %v2750_v38  ;;  %v2758_v59 = vpop.eup %2757  ;;  %v2715_v55 = vld [vmem:[%s3404_s10 + $0x30] sm:$0xff]  }
 0xef0   : > { %v1815_v61 = vmul.f32 %v2758_v59, %v2748_v34 }
 0xef1   : > { %v1704_v58 = vpack.c.bf16 %v1703_v56, %v1703_v56  ;;  %v2716_v56 = vld [vmem:[%s3404_s10 + $0x38] sm:$0xff]  }
 0xef2   : > { %v1816_v62 = vpack.c.bf16 %v1815_v61, %v1815_v61 }
 0xef3   : > { %2590 = vmatmul.mubr.msk.bf16.vlgmr.msra.gmra.mrb[32].mxu1 %vm606_vm2, %v1704_v58 }
 0xef4   : > { %2600 = vmatpush3.bf16.msra.mxu1 %v1823_v60  ;;  %2601 = vmatprep.mubr.msk.bf16.mxu1 %vm2830_vm1, %v2829_v8 }
 0xef5   : > { %2613 = vmatprep.subr.bf16.mxu1 %v2829_v8 }
 0xefb   : > { %2602 = vmatmul.mubr.msk.bf16.vlgmr.msra.gmra.mrb[36].mxu1 %vm606_vm2, %v1816_v62 }
 0xefc   : > { %2617 = vmatprep.mubr.msk.bf16.mxu1 %vm2830_vm1, %v2829_v8  ;;  %2614 = vmatpush3.bf16.msra.mxu1 %v2711_v42 }
 0xefd   : > { %2615 = vmatprep.subr.bf16.mxu1 %v2829_v8 }
 0xf00   : > { %2616 = vmatpush3.bf16.msra.mxu1 %v2712_v30 }
 0xf01   : > { %2633 = vmatprep.subr.bf16.mxu1 %v2829_v8 }
 0xf91   : > { %v1523_v63 = vpop.f32.mrb[24].mxu1 }
 0xf92   : > { %v2567_v0 = vpop.f32.mrb[25].mxu1 }
 0xf93   : > { %v1526_v1 = vpop.f32.mrb[26].mxu1 }
 0xf94   : > { %v2568_v2 = vpop.f32.mrb[27].mxu1 }
 0xfa2   : > { %v1635_v3 = vpop.f32.mrb[28].mxu1 }
 0xfa3   : > { %1866 = vrot.lane.b32.xlu0 %v1635_v3, %s3444_s27  ;;  %v2579_v4 = vpop.f32.mrb[29].mxu1  ;;  %s496_s27 = scalar_lea.vmem [#allocation2], %s2314_s16  ;;  %s2846_s16 = smov [#allocation2]  }
 0xfa4   : > { %v1638_v5 = vpop.f32.mrb[30].mxu1  ;;  %s2242_s26 = sshll.u32 %s496_s27, 4  ;;  %s3354_s26 = int_to_ptr.vmem [resolvable:$true] %s2242_s26 }
 0xfa5   : > { %v2580_v6 = vpop.f32.mrb[31].mxu1  ;;  %v2387_v5 = vld [vmem:[%s3405_s11 + $0x1] ss:$0 sm:$0xff] }
 0xfc6   : > { %v1747_v10 = vpop.f32.mrb[32].mxu1 }
 0xfc7   : > { %1870 = vrot.lane.b32.xlu1 %v1747_v10, %s3445_s25  ;;  %v2591_v11 = vpop.f32.mrb[33].mxu1  ;;  %s2769_s25 = sshll.u32 %s2846_s16, 4  ;;  %s2770_s25 = int_to_ptr.vmem [resolvable:$false] %s2769_s25 }
 0xfc8   : > { %v1750_v12 = vpop.f32.mrb[34].mxu1  ;;  %s2771_s1 = scalar_lea.vmem %s2770_s25, 256  ;;  %p2772_p0 = scmp.lt.s32.totalorder %s3354_s26, %s2770_s25 }
 0xfc9   : > { %v2592_v13 = vpop.f32.mrb[35].mxu1 }
 0xfce   : > { %v1859_v14 = vpop.f32.mrb[36].mxu1 }
 0xfcf   : > { %1874 = vrot.lane.b32.xlu0 %v1859_v14, %s3446_s17  ;;  %v2603_v16 = vpop.f32.mrb[37].mxu1  ;;  %s2399_s17 = sshll.u32 %s2948_s22, 7  ;;  %s2765_s22 = scalar_lea.vmem %s3354_s26, 128 }
 0xfd0   : > { %v1862_v18 = vpop.f32.mrb[38].mxu1  ;;  %s3352_s2 = scalar_lea.hbm %s3409_s15, %s2399_s17  ;;  %p2766_p11 = scmp.ne.s32.totalorder %s3354_s26, %s2765_s22 }
 0xfd1   : > { %v2604_v19 = vpop.f32.mrb[39].mxu1  ;;  %p2773_p1 = scmp.lt.s32.totalorder %s2771_s1, %s2765_s22 }
 0xfd2   : > { %p2767_p12 = pnand %p2766_p11, %p2965_p5 }
 0xfd3   : > { %p2774_p2 = por %p2773_p1, %p2772_p0 }
 0xfd4   : > { %p2768_p13 = pneg %p2767_p12 }
 0xfd6   : > { %p2775_p3 = pnand %p2774_p2, %p2768_p13 }
0x1015   : > { %v1867_v20 = vpop.permute.xlu0 %1866 }
0x1016   : > { %v1877_v22 = vsel %vm606_vm2, %v1523_v63, %v1867_v20 }
0x1039   : > { %v1871_v21 = vpop.permute.xlu1 %1870 }
0x103a   : > { %v1878_v24 = vsel %vm1071_vm5, %v1877_v22, %v1871_v21  ;;  %v2717_v21 = vld [vmem:[%s3407_s13] sm:$0xff]   ;;  %v2718_v22 = vld [vmem:[%s3407_s13 + $0x8] sm:$0xff]  }
0x1041   : > { %v1875_v25 = vpop.permute.xlu0 %1874 }
0x1042   : > { %v1879_v26 = vsel %vm1073_vm6, %v1878_v24, %v1875_v25 }
0x1043   : > { %v1880_v27 = vpack.c.bf16 %v1879_v26, %v1879_v26 }
0x1045   : > { %2610 = vmatmul.mubr.msk.bf16.vlgmr.msra.gmra.mrb[44].mxu0 %vm510_vm0, %v1880_v27  ;;  %v2393_v27 = vld [vmem:[%s3406_s12 + $0x2] sm:$0x3] }
0x1046   : > { %2629 = vmatprep.mubr.msk.bf16.mxu0 %vm2830_vm1, %v2829_v8  ;;  %2622 = vmatpush3.bf16.msra.mxu0 %v2713_v53 }
0x1047   : > { %2623 = vmatprep.subr.bf16.mxu0 %v2829_v8 }
0x104a   : > { %2624 = vmatpush3.bf16.msra.mxu0 %v2714_v54 }
0x104b   : > { %2625 = vmatprep.subr.bf16.mxu0 %v2829_v8 }
0x104e   : > { %2626 = vmatpush3.bf16.msra.mxu0 %v2715_v55 }
0x104f   : > { %2627 = vmatprep.subr.bf16.mxu0 %v2829_v8 }
0x1052   : > { %2628 = vmatpush3.bf16.msra.mxu0 %v2716_v56 }
0x1118   : > { %v1943_v29 = vpop.f32.mrb[44].mxu0 }
0x1119   : > { %v1944_v46 = vadd.f32 %v2364_v28, %v1943_v29  ;;  %v2611_v31 = vpop.f32.mrb[45].mxu0  ;;  %v2153_v28 = vrot.slane %v2393_v27, %v2999_v15 }
0x111a   : > { %v1946_v33 = vpop.f32.mrb[46].mxu0  ;;  %v2158_v31 = vrot.slane %v2393_v27, %v3004_v17 }
0x111b   : > { %v2612_v34 = vpop.f32.mrb[47].mxu0  ;;  %v1949_v35 = vadd.f32 %v1944_v46, %v3181_v32 }
0x111d   : > { %v1952_v36 = vsel %vm510_vm0, %v1949_v35, 0.0 }
0x111e   : > { %1953 = vadd.xlane.f32.xlu1 %v1952_v36 }
0x11ab   : > { %v1954_v37 = vpop.xlane.xlu1 %1953 }
0x11ac   : > { %v1955_v38 = vmul.f32 0.03125, %v1954_v37 }
0x11ae   : > { %v1956_v40 = vsub.f32 %v1949_v35, %v1955_v38 }
0x11b0   : > { %v1957_v23 = vmul.f32 %v1956_v40, %v1956_v40 }
0x11b2   : > { %v1958_v41 = vsel %vm510_vm0, %v1957_v23, 0.0 }
0x11b3   : > { %1959 = vadd.xlane.f32.xlu0 %v1958_v41 }
0x1240   : > { %v1960_v32 = vpop.xlane.xlu0 %1959 }
0x1241   : > { %v1961_v43 = vmul.f32 0.03125, %v1960_v32 }
0x1243   : > { %v1962_v44 = vadd.f32 1e-05, %v1961_v43 }
0x1245   : > { %2759 = vrsqrt.f32 %v1962_v44 }
0x124f   : > { %v2760_v39 = vpop.eup %2759 }
0x1250   : > { %v1964_v48 = vmul.f32 %v2760_v39, %v1956_v40 }
0x1252   : > { %v1969_v50 = vmul.f32 %v1968_v47, %v1964_v48 }
0x1254   : > { %v1974_v51 = vadd.f32 %v1973_v49, %v1969_v50 }
0x1256   : > { %v1975_v52 = vpack.c.bf16 %v1974_v51, %v1974_v51 }
0x1258   : > { %2618 = vmatmul.mubr.msk.bf16.vlgmr.msra.gmra.mrb[40].mxu1 %vm510_vm0, %v1975_v52 }
0x1259   : > { %2637 = vmatprep.mubr.msk.bf16.mxu1 %vm2830_vm1, %v2829_v8  ;;  %2634 = vmatpush3.bf16.msra.mxu1 %v2717_v21 }
0x125a   : > { %2635 = vmatprep.subr.bf16.mxu1 %v2829_v8  ;;  %v2394_v8 = vld [vmem:[%s3408_s14] ss:$0 sm:$0xff] }
0x125d   : > { %2636 = vmatpush3.bf16.msra.mxu1 %v2718_v22 }
0x132b   : > { %v2038_v58 = vpop.f32.mrb[40].mxu1 }
0x132c   : > { %v2039_v59 = vadd.f32 %v2374_v57, %v2038_v58  ;;  %v2619_v60 = vpop.f32.mrb[41].mxu1 }
0x132d   : > { %v2041_v61 = vpop.f32.mrb[42].mxu1 }
0x132e   : > { %v2045_v62 = vmul.f32 0.70710677, %v2039_v59  ;;  %v2620_v63 = vpop.f32.mrb[43].mxu1  ;;  %v2044_v1 = vmul.f32 0.5, %v2039_v59 }
0x1330   : > { %2761 = verf.f32 %v2045_v62 }
0x133a   : > { %v2762_v0 = vpop.eup %2761 }
0x133b   : > { %v2047_v2 = vadd.f32 1.0, %v2762_v0 }
0x133d   : > { %v2048_v3 = vmul.f32 %v2047_v2, %v2044_v1 }
0x133f   : > { %v2049_v4 = vpack.c.bf16 %v2048_v3, %v2048_v3 }
0x1341   : > { %2630 = vmatmul.mubr.msk.bf16.vlgmr.msra.gmra.mrb[48].mxu0 %vm1279_vm7, %v2049_v4 }
0x1414   : > { %v2128_v6 = vpop.f32.mrb[48].mxu0 }
0x1415   : > { %v2129_v7 = vadd.f32 %v2387_v5, %v2128_v6  ;;  %v2631_v9 = vpop.f32.mrb[49].mxu0 }
0x1416   : > { %v2131_v10 = vpop.f32.mrb[50].mxu0 }
0x1417   : > { %v2632_v11 = vpop.f32.mrb[51].mxu0  ;;  %v2134_v12 = vadd.f32 %v2129_v7, %v1974_v51 }
0x1419   : > { %v2137_v13 = vsel %vm510_vm0, %v2134_v12, 0.0 }
0x141a   : > { %2138 = vadd.xlane.f32.xlu0 %v2137_v13 }
0x14a7   : > { %v2139_v14 = vpop.xlane.xlu0 %2138 }
0x14a8   : > { %v2140_v16 = vmul.f32 0.03125, %v2139_v14 }
0x14aa   : > { %v2141_v18 = vsub.f32 %v2134_v12, %v2140_v16 }
0x14ac   : > { %v2142_v19 = vmul.f32 %v2141_v18, %v2141_v18 }
0x14ae   : > { %v2143_v20 = vsel %vm510_vm0, %v2142_v19, 0.0 }
0x14af   : > { %2144 = vadd.xlane.f32.xlu1 %v2143_v20 }
0x153c   : > { %v2145_v24 = vpop.xlane.xlu1 %2144 }
0x153d   : > { %v2146_v25 = vmul.f32 0.03125, %v2145_v24 }
0x153f   : > { %v2147_v26 = vadd.f32 1e-05, %v2146_v25 }
0x1541   : > { %2763 = vrsqrt.f32 %v2147_v26 }
0x154b   : > { %v2764_v29 = vpop.eup %2763 }
0x154c   : > { %v2149_v46 = vmul.f32 %v2764_v29, %v2141_v18 }
0x154e   : > { %v2154_v33 = vmul.f32 %v2153_v28, %v2149_v46 }
0x1550   : > { %v2159_v34 = vadd.f32 %v2158_v31, %v2154_v33 }
0x1552   : > { %v2160_v35 = vpack.c.bf16 %v2159_v34, %v2159_v34 }
0x1554   : > { %2638 = vmatmul.mubr.msk.bf16.vlgmr.msra.gmra.mrb[44].mxu1 %vm510_vm0, %v2160_v35 }
0x1627   : > { %v2221_v15 = vpop.f32.mrb[44].mxu1 }
0x1628   : > { %v2222_v36 = vadd.f32 %v2394_v8, %v2221_v15  ;;  %v2639_v37 = vpop.f32.mrb[45].mxu1 }
0x1629   : > { %v2224_v17 = vpop.f32.mrb[46].mxu1 }
0x162a   : > { %2227 = vst [vmem:[%s496_s27] sm:$0xff] %v2222_v36  ;;  %v2640_v38 = vpop.f32.mrb[47].mxu1 }
0x162b   : > { %2778 = shalt.err (!%p2775_p3)
}
0x162c   : > { %s2779_s30 = scalar_lea.hbm %s3352_s2, 128  ;;  %s2783_s23 = scalar_lea.hbm %s3409_s15, 256 }
0x162d   : > { %p2780_p4 = scmp.ne.s32.totalorder %s3352_s2, %s2779_s30  ;;  %p2784_p9 = scmp.lt.u32.totalorder %s3352_s2, %s3409_s15 }
0x162e   : > { %p2785_p10 = scmp.lt.u32.totalorder %s2783_s23, %s2779_s30  ;;  %p2787_p12 = scmp.lt.u32.totalorder %s2779_s30, %s3352_s2 }
0x162f   : > { %p2781_p7 = pnand %p2780_p4, %p2965_p5 }
0x1630   : > { %p2786_p11 = por %p2785_p10, %p2784_p9 }
0x1631   : > { %p2782_p8 = pneg %p2781_p7 }
0x1632   : > { %p2788_p13 = por %p2787_p12, %p2786_p11 }
0x1634   : > { %p2789_p0 = pnand %p2788_p13, %p2782_p8 }
0x1636   : > { %2792 = shalt.err (!%p2789_p0)
}
0x1637   : > { %2641 = dma.vmem_to_hbm [thread:$0]  (%p2965_p5), %s3354_s26, 128, %s3352_s2, %s2229_s0  }
0x1638 PF: > { %p2647_p1 = scmp.ge.s32.totalorder %s2827_s21, 2  ;;  %s2254_s22 = sand.u32 1, %s2815_s18  }
0x1639   : > { %s2255_s1 = scalar_lea.sflag [#allocation3], %s2254_s22 }
0x163a   : > { %p2644_p2 = pnand %p2647_p1, %p2969_p6 }
0x163c   : > { %2810 = dma.done.wait (!%p2644_p2), %s2255_s1, 128  }
0x163d   : > { %2812 = vsyncadd (!%p2644_p2), %s2255_s1, 4294967168  ;;  %s3447_s30 = sld [smem:[#allocation5_spill]]  ;;  %p25_p3 = scmp.ge.s32.totalorder %s2952_s24, 4  }
0x163e   : > { %s3448_s18 = smov %s2819_s19  ;;  %s3449_s19 = smov %s2823_s20 }
0x163f   : > { %s3451_s21 = smov %s2952_s24  ;;  %27 = sbr.rel (!%p25_p3) target bundleno = 7 (0x7), region = 128 }
0x1643   : > { %s3450_s20 = smov %s3447_s30 }
0x1646   :  { %2260 = vsyncpa [#allocation3], 1 }
0x1647   :  { %2262 = vsyncpa [#allocation3 + $0x1], 1 }

</bundles_post_ra>
